<compile_context>
chip_gen: v6e
topology: v6e:2x2x1
jax: 0.10.0
libtpu: 0.0.40
codegen_flags: <defaults>
</compile_context>

<pallas_src>
import math

import jax
import jax.numpy as jnp
from jax import lax
from jax.experimental import pallas as pl
from jax.experimental.pallas import tpu as pltpu


_VMEM_SPEC = pl.BlockSpec(memory_space=pltpu.MemorySpace.VMEM)


# ----------------------------------------------------------------------------
# Fused whole-model Pallas kernel (factory closed over static sizes)
# ----------------------------------------------------------------------------
def _make_fused_kernel(T, B, H, num_layers):
    G = 4 * H  # gates per direction; with H=32, G=128 (one full lane group)

    def cell(gates, c):
        # Gate order (i, f, o, g): sigmoid on one contiguous 3H slice,
        # tanh on the trailing H slice.
        sig = jax.nn.sigmoid(gates[:, :3 * H])
        g = jnp.tanh(gates[:, 3 * H:])
        i = sig[:, :H]
        f = sig[:, H:2 * H]
        o = sig[:, 2 * H:]
        c_new = f * c + i * g
        h_new = o * jnp.tanh(c_new)
        return h_new, c_new

    def run_layer(gx, whh_f_ref, whh_b_ref):
        """Bidirectional recurrence for one layer, fully unrolled over T.

        gx: (T*B, 8H) f32 value; columns = [fwd 4H | bwd 4H], gates (i,f,o,g).
        Returns python lists of (B, H) f32 hidden states indexed by TIME step
        for the forward and backward directions.
        """
        whh_f = whh_f_ref[...]          # (H, 4H) bf16, loop-invariant load
        whh_b = whh_b_ref[...]
        h_f = jnp.zeros((B, H), jnp.float32)
        h_b = jnp.zeros((B, H), jnp.float32)
        c_f = jnp.zeros((B, H), jnp.float32)
        c_b = jnp.zeros((B, H), jnp.float32)
        hf_by_t = [None] * T
        hb_by_t = [None] * T
        for t in range(T):              # static full unroll (tiny fixed T)
            rt = T - 1 - t              # time index processed by bwd direction
            # Two independent (B,H)x(H,4H) MXU matmuls, outputs full 128 lanes.
            gh_f = jnp.dot(h_f.astype(jnp.bfloat16), whh_f,
                           preferred_element_type=jnp.float32)
            gh_b = jnp.dot(h_b.astype(jnp.bfloat16), whh_b,
                           preferred_element_type=jnp.float32)
            gates_f = gx[t * B:(t + 1) * B, :G] + gh_f        # static slices
            gates_b = gx[rt * B:(rt + 1) * B, G:] + gh_b
            h_f, c_f = cell(gates_f, c_f)
            h_b, c_b = cell(gates_b, c_b)
            hf_by_t[t] = h_f
            hb_by_t[rt] = h_b
        return hf_by_t, hb_by_t

    def kernel(*refs):
        x_ref = refs[0]                                   # (T*B, F) f32
        wih0_ref, b0_ref, whh0f_ref, whh0b_ref = refs[1:5]
        idx = 5
        deeper = []
        for _ in range(num_layers - 1):
            deeper.append(refs[idx:idx + 5])
            idx += 5
        wfcf_ref, wfcb_ref, bfc_ref = refs[idx:idx + 3]
        out_ref = refs[idx + 3]

        # ---- Layer 0 input projection (both directions, one MXU matmul) ----
        gx = (jnp.dot(x_ref[...].astype(jnp.bfloat16), wih0_ref[...],
                      preferred_element_type=jnp.float32)
              + b0_ref[...])                              # (T*B, 8H) f32
        hf_by_t, hb_by_t = run_layer(gx, whh0f_ref, whh0b_ref)

        # ---- Deeper layers: projection of previous hidden states + recurrence
        # (inter-layer dropout is identity at inference time)
        for wihf_ref, wihb_ref, b_ref, whhf_ref, whhb_ref in deeper:
            hf_all = jnp.concatenate(hf_by_t, axis=0)     # (T*B, H) sublane stack
            hb_all = jnp.concatenate(hb_by_t, axis=0)     # (T*B, H)
            gx = (jnp.dot(hf_all.astype(jnp.bfloat16), wihf_ref[...],
                          preferred_element_type=jnp.float32)
                  + jnp.dot(hb_all.astype(jnp.bfloat16), wihb_ref[...],
                            preferred_element_type=jnp.float32)
                  + b_ref[...])                           # (T*B, 8H)
            hf_by_t, hb_by_t = run_layer(gx, whhf_ref, whhb_ref)

        # ---- Final Linear(2H -> 1) on the last time step, VPU mul + reduce --
        h_last_f = hf_by_t[T - 1]   # fwd hidden at time T-1
        h_last_b = hb_by_t[T - 1]   # bwd hidden at time T-1 (first bwd step)
        out = (jnp.sum(h_last_f * wfcf_ref[...], axis=-1, keepdims=True)
               + jnp.sum(h_last_b * wfcb_ref[...], axis=-1, keepdims=True)
               + bfc_ref[...])
        out_ref[...] = out

    return kernel


# ----------------------------------------------------------------------------
# Weight preparation (one-time: transposes, gate reorder, bias fold, bf16 cast)
# ----------------------------------------------------------------------------
def _reorder_ifgo_to_ifog(w):
    """Permute PyTorch gate blocks (i, f, g, o) -> (i, f, o, g) along axis 0."""
    H = w.shape[0] // 4
    return jnp.concatenate([w[:2 * H], w[3 * H:], w[2 * H:3 * H]], axis=0)


def prepare_params(params):
    prepared = {"layers": []}
    for li, layer_p in enumerate(params["lstm"]):
        w_ih_f, w_hh_f, b_ih_f, b_hh_f = layer_p["fwd"]
        w_ih_b, w_hh_b, b_ih_b, b_hh_b = layer_p["bwd"]
        H = w_hh_f.shape[1]

        # (in_features, 8H): both directions' input->hidden weights side by side
        w_ih_packed = jnp.concatenate(
            [_reorder_ifgo_to_ifog(w_ih_f).T, _reorder_ifgo_to_ifog(w_ih_b).T],
            axis=1).astype(jnp.bfloat16)
        # Folded biases, both directions: (1, 8H) f32
        b_packed = jnp.concatenate(
            [_reorder_ifgo_to_ifog(b_ih_f + b_hh_f),
             _reorder_ifgo_to_ifog(b_ih_b + b_hh_b)]
        ).reshape(1, 8 * H).astype(jnp.float32)

        lp = {
            "b": b_packed,
            "w_hh_f": _reorder_ifgo_to_ifog(w_hh_f).T.astype(jnp.bfloat16),  # (H,4H)
            "w_hh_b": _reorder_ifgo_to_ifog(w_hh_b).T.astype(jnp.bfloat16),  # (H,4H)
        }
        if li == 0:
            lp["w_ih"] = w_ih_packed                   # (F, 8H)
        else:
            # Split by the previous layer's [fwd hidden | bwd hidden] features
            lp["w_ih_f"] = w_ih_packed[:H, :]          # (H, 8H)
            lp["w_ih_b"] = w_ih_packed[H:, :]          # (H, 8H)
        prepared["layers"].append(lp)

    w_fc, b_fc = params["fc"]
    H = params["lstm"][0]["fwd"][1].shape[1]
    prepared["w_fc_f"] = w_fc[:, :H].astype(jnp.float32)   # (1, H)
    prepared["w_fc_b"] = w_fc[:, H:].astype(jnp.float32)   # (1, H)
    prepared["b_fc"] = b_fc.reshape(1, 1).astype(jnp.float32)
    return prepared


# ----------------------------------------------------------------------------
# Forward wrapper: one pallas_call for the whole model
# ----------------------------------------------------------------------------
def bilstm_regressor_forward(prepared, x):
    """x: (batch, seq, input_size) float32  ->  (batch, 1) float32."""
    B, T, _ = x.shape
    layers = prepared["layers"]
    num_layers = len(layers)
    H = layers[0]["w_hh_f"].shape[0]

    # Time-major and flattened over (time, batch) so the in-kernel input
    # projection is a single well-shaped 2-D matmul.
    x_tm = jnp.transpose(x, (1, 0, 2)).reshape(T * B, -1).astype(jnp.float32)

    args = [x_tm, layers[0]["w_ih"], layers[0]["b"],
            layers[0]["w_hh_f"], layers[0]["w_hh_b"]]
    for lp in layers[1:]:
        args += [lp["w_ih_f"], lp["w_ih_b"], lp["b"], lp["w_hh_f"], lp["w_hh_b"]]
    args += [prepared["w_fc_f"], prepared["w_fc_b"], prepared["b_fc"]]

    return pl.pallas_call(
        _make_fused_kernel(T, B, H, num_layers),
        out_shape=jax.ShapeDtypeStruct((B, 1), jnp.float32),
        in_specs=[_VMEM_SPEC] * len(args),
        out_specs=_VMEM_SPEC,
        compiler_params=pltpu.CompilerParams(vmem_limit_bytes=8 * 1024 * 1024),
    )(*args)


# ----------------------------------------------------------------------------
# Deterministic parameter initialization (PyTorch-style shapes / bounds)
# ----------------------------------------------------------------------------
def init_params(key, input_size, hidden_size, num_layers):
    k_lstm = 1.0 / math.sqrt(hidden_size)
    params = {"lstm": []}
    for layer in range(num_layers):
        in_feat = input_size if layer == 0 else 2 * hidden_size
        layer_p = {}
        for dname in ("fwd", "bwd"):
            key, k1, k2, k3, k4 = jax.random.split(key, 5)
            w_ih = jax.random.uniform(k1, (4 * hidden_size, in_feat),
                                      jnp.float32, -k_lstm, k_lstm)
            w_hh = jax.random.uniform(k2, (4 * hidden_size, hidden_size),
                                      jnp.float32, -k_lstm, k_lstm)
            b_ih = jax.random.uniform(k3, (4 * hidden_size,),
                                      jnp.float32, -k_lstm, k_lstm)
            b_hh = jax.random.uniform(k4, (4 * hidden_size,),
                                      jnp.float32, -k_lstm, k_lstm)
            layer_p[dname] = (w_ih, w_hh, b_ih, b_hh)
        params["lstm"].append(layer_p)

    key, k1, k2 = jax.random.split(key, 3)
    k_fc = 1.0 / math.sqrt(2 * hidden_size)
    w_fc = jax.random.uniform(k1, (1, 2 * hidden_size), jnp.float32, -k_fc, k_fc)
    b_fc = jax.random.uniform(k2, (1,), jnp.float32, -k_fc, k_fc)
    params["fc"] = (w_fc, b_fc)
    return params


# ----------------------------------------------------------------------------
# Pure-JAX reference (PyTorch semantics) for a correctness sanity check
# ----------------------------------------------------------------------------
def _ref_lstm_direction(x_tm, w_ih, w_hh, b_ih, b_hh):
    T, B, _ = x_tm.shape
    H = w_hh.shape[1]

    def step(carry, x_t):
        h, c = carry
        gates = x_t @ w_ih.T + h @ w_hh.T + b_ih + b_hh
        i = jax.nn.sigmoid(gates[:, 0 * H:1 * H])
        f = jax.nn.sigmoid(gates[:, 1 * H:2 * H])
        g = jnp.tanh(gates[:, 2 * H:3 * H])
        o = jax.nn.sigmoid(gates[:, 3 * H:4 * H])
        c = f * c + i * g
        h = o * jnp.tanh(c)
        return (h, c), h

    init = (jnp.zeros((B, H), jnp.float32), jnp.zeros((B, H), jnp.float32))
    _, hs = lax.scan(step, init, x_tm)
    return hs


def _ref_forward(params, x):
    layer_in = jnp.transpose(x, (1, 0, 2)).astype(jnp.float32)
    for layer_p in params["lstm"]:
        fwd = _ref_lstm_direction(layer_in, *layer_p["fwd"])
        bwd = _ref_lstm_direction(layer_in[::-1], *layer_p["bwd"])[::-1]
        layer_in = jnp.concatenate([fwd, bwd], axis=-1)
    last = layer_in[-1]
    w_fc, b_fc = params["fc"]
    return last @ w_fc.T + b_fc


# ----------------------------------------------------------------------------
if __name__ == "__main__":
    batch = 8
    seq = 8
    input_size = 8
    hidden_size = 32
    num_layers = 2

    key = jax.random.PRNGKey(0)
    key, pkey, xkey = jax.random.split(key, 3)
    raw_params = init_params(pkey, input_size, hidden_size, num_layers)
    prepared = prepare_params(raw_params)
    x = jax.random.normal(xkey, (batch, seq, input_size), jnp.float32)

    fwd_fn = jax.jit(bilstm_regressor_forward)
    out = jax.block_until_ready(fwd_fn(prepared, x))

    ref = _ref_forward(raw_params, x)
    assert out.shape == (batch, 1), out.shape
    # bf16 MXU operands (with f32 accumulation) vs. the f32 reference: use a
    # slightly looser tolerance than pure-f32 would need.
    assert jnp.allclose(out, ref, rtol=2e-2, atol=2e-2), (out, ref)

    print("KERNEL_OK")
</pallas_src>

<mosaic_0001>
module attributes {stable_mosaic.version = 11 : i64} {
  func.func @kernel(%arg0: memref<64x8xf32, #tpu.memory_space<vmem>>, %arg1: memref<8x256xbf16, #tpu.memory_space<vmem>>, %arg2: memref<1x256xf32, #tpu.memory_space<vmem>>, %arg3: memref<32x128xbf16, #tpu.memory_space<vmem>>, %arg4: memref<32x128xbf16, #tpu.memory_space<vmem>>, %arg5: memref<32x256xbf16, #tpu.memory_space<vmem>>, %arg6: memref<32x256xbf16, #tpu.memory_space<vmem>>, %arg7: memref<1x256xf32, #tpu.memory_space<vmem>>, %arg8: memref<32x128xbf16, #tpu.memory_space<vmem>>, %arg9: memref<32x128xbf16, #tpu.memory_space<vmem>>, %arg10: memref<1x32xf32, #tpu.memory_space<vmem>>, %arg11: memref<1x32xf32, #tpu.memory_space<vmem>>, %arg12: memref<1x1xf32, #tpu.memory_space<vmem>>, %arg13: memref<8x1xf32, #tpu.memory_space<vmem>>) attributes {dimension_semantics = [], scalar_prefetch = 0 : i64, scratch_operands = 0 : i64, tpu.core_type = #tpu.core_type<tc>} {
    %c0 = arith.constant 0 : index
    %c0_0 = arith.constant 0 : index
    %0 = vector.load %arg0[%c0, %c0_0] : memref<64x8xf32, #tpu.memory_space<vmem>>, vector<64x8xf32>
    %1 = arith.truncf %0 : vector<64x8xf32> to vector<64x8xbf16>
    %c0_1 = arith.constant 0 : index
    %c0_2 = arith.constant 0 : index
    %2 = vector.load %arg1[%c0_1, %c0_2] : memref<8x256xbf16, #tpu.memory_space<vmem>>, vector<8x256xbf16>
    %cst = arith.constant dense<0.000000e+00> : vector<64x256xf32>
    %3 = tpu.matmul %1, %2, %cst {dimension_numbers = #tpu.dot_dimension_numbers<[1], [0], [0], [1], [0, 0, 1, 1], [], []>} : vector<64x8xbf16>, vector<8x256xbf16>, vector<64x256xf32> -> vector<64x256xf32>
    %c0_3 = arith.constant 0 : index
    %c0_4 = arith.constant 0 : index
    %4 = vector.load %arg2[%c0_3, %c0_4] : memref<1x256xf32, #tpu.memory_space<vmem>>, vector<1x256xf32>
    %5 = vector.broadcast %4 : vector<1x256xf32> to vector<64x256xf32>
    %6 = arith.addf %3, %5 : vector<64x256xf32>
    %c0_5 = arith.constant 0 : index
    %c0_6 = arith.constant 0 : index
    %7 = vector.load %arg3[%c0_5, %c0_6] : memref<32x128xbf16, #tpu.memory_space<vmem>>, vector<32x128xbf16>
    %c0_7 = arith.constant 0 : index
    %c0_8 = arith.constant 0 : index
    %8 = vector.load %arg4[%c0_7, %c0_8] : memref<32x128xbf16, #tpu.memory_space<vmem>>, vector<32x128xbf16>
    %cst_9 = arith.constant 0.000000e+00 : f32
    %9 = vector.broadcast %cst_9 : f32 to vector<8x32xf32>
    %cst_10 = arith.constant 0.000000e+00 : f32
    %10 = vector.broadcast %cst_10 : f32 to vector<8x32xf32>
    %cst_11 = arith.constant 0.000000e+00 : f32
    %11 = vector.broadcast %cst_11 : f32 to vector<8x32xf32>
    %cst_12 = arith.constant 0.000000e+00 : f32
    %12 = vector.broadcast %cst_12 : f32 to vector<8x32xf32>
    %13 = arith.truncf %9 : vector<8x32xf32> to vector<8x32xbf16>
    %cst_13 = arith.constant dense<0.000000e+00> : vector<8x128xf32>
    %14 = tpu.matmul %13, %7, %cst_13 {dimension_numbers = #tpu.dot_dimension_numbers<[1], [0], [0], [1], [0, 0, 1, 1], [], []>} : vector<8x32xbf16>, vector<32x128xbf16>, vector<8x128xf32> -> vector<8x128xf32>
    %15 = arith.truncf %10 : vector<8x32xf32> to vector<8x32xbf16>
    %cst_14 = arith.constant dense<0.000000e+00> : vector<8x128xf32>
    %16 = tpu.matmul %15, %8, %cst_14 {dimension_numbers = #tpu.dot_dimension_numbers<[1], [0], [0], [1], [0, 0, 1, 1], [], []>} : vector<8x32xbf16>, vector<32x128xbf16>, vector<8x128xf32> -> vector<8x128xf32>
    %17 = vector.extract_strided_slice %6 {offsets = [0, 0], sizes = [8, 128], strides = [1, 1]} : vector<64x256xf32> to vector<8x128xf32>
    %18 = arith.addf %17, %14 : vector<8x128xf32>
    %19 = vector.extract_strided_slice %6 {offsets = [56, 128], sizes = [8, 128], strides = [1, 1]} : vector<64x256xf32> to vector<8x128xf32>
    %20 = arith.addf %19, %16 : vector<8x128xf32>
    %21 = vector.extract_strided_slice %18 {offsets = [0, 0], sizes = [8, 96], strides = [1, 1]} : vector<8x128xf32> to vector<8x96xf32>
    %22 = arith.negf %21 : vector<8x96xf32>
    %23 = math.exp %22 : vector<8x96xf32>
    %cst_15 = arith.constant 1.000000e+00 : f32
    %24 = vector.broadcast %cst_15 : f32 to vector<8x96xf32>
    %25 = arith.addf %24, %23 : vector<8x96xf32>
    %26 = arith.divf %24, %25 : vector<8x96xf32>
    %27 = vector.extract_strided_slice %18 {offsets = [0, 96], sizes = [8, 32], strides = [1, 1]} : vector<8x128xf32> to vector<8x32xf32>
    %28 = math.tanh %27 : vector<8x32xf32>
    %29 = vector.extract_strided_slice %26 {offsets = [0, 0], sizes = [8, 32], strides = [1, 1]} : vector<8x96xf32> to vector<8x32xf32>
    %30 = vector.extract_strided_slice %26 {offsets = [0, 32], sizes = [8, 32], strides = [1, 1]} : vector<8x96xf32> to vector<8x32xf32>
    %31 = vector.extract_strided_slice %26 {offsets = [0, 64], sizes = [8, 32], strides = [1, 1]} : vector<8x96xf32> to vector<8x32xf32>
    %32 = arith.mulf %30, %11 : vector<8x32xf32>
    %33 = arith.mulf %29, %28 : vector<8x32xf32>
    %34 = arith.addf %32, %33 : vector<8x32xf32>
    %35 = math.tanh %34 : vector<8x32xf32>
    %36 = arith.mulf %31, %35 : vector<8x32xf32>
    %37 = vector.extract_strided_slice %20 {offsets = [0, 0], sizes = [8, 96], strides = [1, 1]} : vector<8x128xf32> to vector<8x96xf32>
    %38 = arith.negf %37 : vector<8x96xf32>
    %39 = math.exp %38 : vector<8x96xf32>
    %cst_16 = arith.constant 1.000000e+00 : f32
    %40 = vector.broadcast %cst_16 : f32 to vector<8x96xf32>
    %41 = arith.addf %40, %39 : vector<8x96xf32>
    %42 = arith.divf %40, %41 : vector<8x96xf32>
    %43 = vector.extract_strided_slice %20 {offsets = [0, 96], sizes = [8, 32], strides = [1, 1]} : vector<8x128xf32> to vector<8x32xf32>
    %44 = math.tanh %43 : vector<8x32xf32>
    %45 = vector.extract_strided_slice %42 {offsets = [0, 0], sizes = [8, 32], strides = [1, 1]} : vector<8x96xf32> to vector<8x32xf32>
    %46 = vector.extract_strided_slice %42 {offsets = [0, 32], sizes = [8, 32], strides = [1, 1]} : vector<8x96xf32> to vector<8x32xf32>
    %47 = vector.extract_strided_slice %42 {offsets = [0, 64], sizes = [8, 32], strides = [1, 1]} : vector<8x96xf32> to vector<8x32xf32>
    %48 = arith.mulf %46, %12 : vector<8x32xf32>
    %49 = arith.mulf %45, %44 : vector<8x32xf32>
    %50 = arith.addf %48, %49 : vector<8x32xf32>
    %51 = math.tanh %50 : vector<8x32xf32>
    %52 = arith.mulf %47, %51 : vector<8x32xf32>
    %53 = arith.truncf %36 : vector<8x32xf32> to vector<8x32xbf16>
    %cst_17 = arith.constant dense<0.000000e+00> : vector<8x128xf32>
    %54 = tpu.matmul %53, %7, %cst_17 {dimension_numbers = #tpu.dot_dimension_numbers<[1], [0], [0], [1], [0, 0, 1, 1], [], []>} : vector<8x32xbf16>, vector<32x128xbf16>, vector<8x128xf32> -> vector<8x128xf32>
    %55 = arith.truncf %52 : vector<8x32xf32> to vector<8x32xbf16>
    %cst_18 = arith.constant dense<0.000000e+00> : vector<8x128xf32>
    %56 = tpu.matmul %55, %8, %cst_18 {dimension_numbers = #tpu.dot_dimension_numbers<[1], [0], [0], [1], [0, 0, 1, 1], [], []>} : vector<8x32xbf16>, vector<32x128xbf16>, vector<8x128xf32> -> vector<8x128xf32>
    %57 = vector.extract_strided_slice %6 {offsets = [8, 0], sizes = [8, 128], strides = [1, 1]} : vector<64x256xf32> to vector<8x128xf32>
    %58 = arith.addf %57, %54 : vector<8x128xf32>
    %59 = vector.extract_strided_slice %6 {offsets = [48, 128], sizes = [8, 128], strides = [1, 1]} : vector<64x256xf32> to vector<8x128xf32>
    %60 = arith.addf %59, %56 : vector<8x128xf32>
    %61 = vector.extract_strided_slice %58 {offsets = [0, 0], sizes = [8, 96], strides = [1, 1]} : vector<8x128xf32> to vector<8x96xf32>
    %62 = arith.negf %61 : vector<8x96xf32>
    %63 = math.exp %62 : vector<8x96xf32>
    %cst_19 = arith.constant 1.000000e+00 : f32
    %64 = vector.broadcast %cst_19 : f32 to vector<8x96xf32>
    %65 = arith.addf %64, %63 : vector<8x96xf32>
    %66 = arith.divf %64, %65 : vector<8x96xf32>
    %67 = vector.extract_strided_slice %58 {offsets = [0, 96], sizes = [8, 32], strides = [1, 1]} : vector<8x128xf32> to vector<8x32xf32>
    %68 = math.tanh %67 : vector<8x32xf32>
    %69 = vector.extract_strided_slice %66 {offsets = [0, 0], sizes = [8, 32], strides = [1, 1]} : vector<8x96xf32> to vector<8x32xf32>
    %70 = vector.extract_strided_slice %66 {offsets = [0, 32], sizes = [8, 32], strides = [1, 1]} : vector<8x96xf32> to vector<8x32xf32>
    %71 = vector.extract_strided_slice %66 {offsets = [0, 64], sizes = [8, 32], strides = [1, 1]} : vector<8x96xf32> to vector<8x32xf32>
    %72 = arith.mulf %70, %34 : vector<8x32xf32>
    %73 = arith.mulf %69, %68 : vector<8x32xf32>
    %74 = arith.addf %72, %73 : vector<8x32xf32>
    %75 = math.tanh %74 : vector<8x32xf32>
    %76 = arith.mulf %71, %75 : vector<8x32xf32>
    %77 = vector.extract_strided_slice %60 {offsets = [0, 0], sizes = [8, 96], strides = [1, 1]} : vector<8x128xf32> to vector<8x96xf32>
    %78 = arith.negf %77 : vector<8x96xf32>
    %79 = math.exp %78 : vector<8x96xf32>
    %cst_20 = arith.constant 1.000000e+00 : f32
    %80 = vector.broadcast %cst_20 : f32 to vector<8x96xf32>
    %81 = arith.addf %80, %79 : vector<8x96xf32>
    %82 = arith.divf %80, %81 : vector<8x96xf32>
    %83 = vector.extract_strided_slice %60 {offsets = [0, 96], sizes = [8, 32], strides = [1, 1]} : vector<8x128xf32> to vector<8x32xf32>
    %84 = math.tanh %83 : vector<8x32xf32>
    %85 = vector.extract_strided_slice %82 {offsets = [0, 0], sizes = [8, 32], strides = [1, 1]} : vector<8x96xf32> to vector<8x32xf32>
    %86 = vector.extract_strided_slice %82 {offsets = [0, 32], sizes = [8, 32], strides = [1, 1]} : vector<8x96xf32> to vector<8x32xf32>
    %87 = vector.extract_strided_slice %82 {offsets = [0, 64], sizes = [8, 32], strides = [1, 1]} : vector<8x96xf32> to vector<8x32xf32>
    %88 = arith.mulf %86, %50 : vector<8x32xf32>
    %89 = arith.mulf %85, %84 : vector<8x32xf32>
    %90 = arith.addf %88, %89 : vector<8x32xf32>
    %91 = math.tanh %90 : vector<8x32xf32>
    %92 = arith.mulf %87, %91 : vector<8x32xf32>
    %93 = arith.truncf %76 : vector<8x32xf32> to vector<8x32xbf16>
    %cst_21 = arith.constant dense<0.000000e+00> : vector<8x128xf32>
    %94 = tpu.matmul %93, %7, %cst_21 {dimension_numbers = #tpu.dot_dimension_numbers<[1], [0], [0], [1], [0, 0, 1, 1], [], []>} : vector<8x32xbf16>, vector<32x128xbf16>, vector<8x128xf32> -> vector<8x128xf32>
    %95 = arith.truncf %92 : vector<8x32xf32> to vector<8x32xbf16>
    %cst_22 = arith.constant dense<0.000000e+00> : vector<8x128xf32>
    %96 = tpu.matmul %95, %8, %cst_22 {dimension_numbers = #tpu.dot_dimension_numbers<[1], [0], [0], [1], [0, 0, 1, 1], [], []>} : vector<8x32xbf16>, vector<32x128xbf16>, vector<8x128xf32> -> vector<8x128xf32>
    %97 = vector.extract_strided_slice %6 {offsets = [16, 0], sizes = [8, 128], strides = [1, 1]} : vector<64x256xf32> to vector<8x128xf32>
    %98 = arith.addf %97, %94 : vector<8x128xf32>
    %99 = vector.extract_strided_slice %6 {offsets = [40, 128], sizes = [8, 128], strides = [1, 1]} : vector<64x256xf32> to vector<8x128xf32>
    %100 = arith.addf %99, %96 : vector<8x128xf32>
    %101 = vector.extract_strided_slice %98 {offsets = [0, 0], sizes = [8, 96], strides = [1, 1]} : vector<8x128xf32> to vector<8x96xf32>
    %102 = arith.negf %101 : vector<8x96xf32>
    %103 = math.exp %102 : vector<8x96xf32>
    %cst_23 = arith.constant 1.000000e+00 : f32
    %104 = vector.broadcast %cst_23 : f32 to vector<8x96xf32>
    %105 = arith.addf %104, %103 : vector<8x96xf32>
    %106 = arith.divf %104, %105 : vector<8x96xf32>
    %107 = vector.extract_strided_slice %98 {offsets = [0, 96], sizes = [8, 32], strides = [1, 1]} : vector<8x128xf32> to vector<8x32xf32>
    %108 = math.tanh %107 : vector<8x32xf32>
    %109 = vector.extract_strided_slice %106 {offsets = [0, 0], sizes = [8, 32], strides = [1, 1]} : vector<8x96xf32> to vector<8x32xf32>
    %110 = vector.extract_strided_slice %106 {offsets = [0, 32], sizes = [8, 32], strides = [1, 1]} : vector<8x96xf32> to vector<8x32xf32>
    %111 = vector.extract_strided_slice %106 {offsets = [0, 64], sizes = [8, 32], strides = [1, 1]} : vector<8x96xf32> to vector<8x32xf32>
    %112 = arith.mulf %110, %74 : vector<8x32xf32>
    %113 = arith.mulf %109, %108 : vector<8x32xf32>
    %114 = arith.addf %112, %113 : vector<8x32xf32>
    %115 = math.tanh %114 : vector<8x32xf32>
    %116 = arith.mulf %111, %115 : vector<8x32xf32>
    %117 = vector.extract_strided_slice %100 {offsets = [0, 0], sizes = [8, 96], strides = [1, 1]} : vector<8x128xf32> to vector<8x96xf32>
    %118 = arith.negf %117 : vector<8x96xf32>
    %119 = math.exp %118 : vector<8x96xf32>
    %cst_24 = arith.constant 1.000000e+00 : f32
    %120 = vector.broadcast %cst_24 : f32 to vector<8x96xf32>
    %121 = arith.addf %120, %119 : vector<8x96xf32>
    %122 = arith.divf %120, %121 : vector<8x96xf32>
    %123 = vector.extract_strided_slice %100 {offsets = [0, 96], sizes = [8, 32], strides = [1, 1]} : vector<8x128xf32> to vector<8x32xf32>
    %124 = math.tanh %123 : vector<8x32xf32>
    %125 = vector.extract_strided_slice %122 {offsets = [0, 0], sizes = [8, 32], strides = [1, 1]} : vector<8x96xf32> to vector<8x32xf32>
    %126 = vector.extract_strided_slice %122 {offsets = [0, 32], sizes = [8, 32], strides = [1, 1]} : vector<8x96xf32> to vector<8x32xf32>
    %127 = vector.extract_strided_slice %122 {offsets = [0, 64], sizes = [8, 32], strides = [1, 1]} : vector<8x96xf32> to vector<8x32xf32>
    %128 = arith.mulf %126, %90 : vector<8x32xf32>
    %129 = arith.mulf %125, %124 : vector<8x32xf32>
    %130 = arith.addf %128, %129 : vector<8x32xf32>
    %131 = math.tanh %130 : vector<8x32xf32>
    %132 = arith.mulf %127, %131 : vector<8x32xf32>
    %133 = arith.truncf %116 : vector<8x32xf32> to vector<8x32xbf16>
    %cst_25 = arith.constant dense<0.000000e+00> : vector<8x128xf32>
    %134 = tpu.matmul %133, %7, %cst_25 {dimension_numbers = #tpu.dot_dimension_numbers<[1], [0], [0], [1], [0, 0, 1, 1], [], []>} : vector<8x32xbf16>, vector<32x128xbf16>, vector<8x128xf32> -> vector<8x128xf32>
    %135 = arith.truncf %132 : vector<8x32xf32> to vector<8x32xbf16>
    %cst_26 = arith.constant dense<0.000000e+00> : vector<8x128xf32>
    %136 = tpu.matmul %135, %8, %cst_26 {dimension_numbers = #tpu.dot_dimension_numbers<[1], [0], [0], [1], [0, 0, 1, 1], [], []>} : vector<8x32xbf16>, vector<32x128xbf16>, vector<8x128xf32> -> vector<8x128xf32>
    %137 = vector.extract_strided_slice %6 {offsets = [24, 0], sizes = [8, 128], strides = [1, 1]} : vector<64x256xf32> to vector<8x128xf32>
    %138 = arith.addf %137, %134 : vector<8x128xf32>
    %139 = vector.extract_strided_slice %6 {offsets = [32, 128], sizes = [8, 128], strides = [1, 1]} : vector<64x256xf32> to vector<8x128xf32>
    %140 = arith.addf %139, %136 : vector<8x128xf32>
    %141 = vector.extract_strided_slice %138 {offsets = [0, 0], sizes = [8, 96], strides = [1, 1]} : vector<8x128xf32> to vector<8x96xf32>
    %142 = arith.negf %141 : vector<8x96xf32>
    %143 = math.exp %142 : vector<8x96xf32>
    %cst_27 = arith.constant 1.000000e+00 : f32
    %144 = vector.broadcast %cst_27 : f32 to vector<8x96xf32>
    %145 = arith.addf %144, %143 : vector<8x96xf32>
    %146 = arith.divf %144, %145 : vector<8x96xf32>
    %147 = vector.extract_strided_slice %138 {offsets = [0, 96], sizes = [8, 32], strides = [1, 1]} : vector<8x128xf32> to vector<8x32xf32>
    %148 = math.tanh %147 : vector<8x32xf32>
    %149 = vector.extract_strided_slice %146 {offsets = [0, 0], sizes = [8, 32], strides = [1, 1]} : vector<8x96xf32> to vector<8x32xf32>
    %150 = vector.extract_strided_slice %146 {offsets = [0, 32], sizes = [8, 32], strides = [1, 1]} : vector<8x96xf32> to vector<8x32xf32>
    %151 = vector.extract_strided_slice %146 {offsets = [0, 64], sizes = [8, 32], strides = [1, 1]} : vector<8x96xf32> to vector<8x32xf32>
    %152 = arith.mulf %150, %114 : vector<8x32xf32>
    %153 = arith.mulf %149, %148 : vector<8x32xf32>
    %154 = arith.addf %152, %153 : vector<8x32xf32>
    %155 = math.tanh %154 : vector<8x32xf32>
    %156 = arith.mulf %151, %155 : vector<8x32xf32>
    %157 = vector.extract_strided_slice %140 {offsets = [0, 0], sizes = [8, 96], strides = [1, 1]} : vector<8x128xf32> to vector<8x96xf32>
    %158 = arith.negf %157 : vector<8x96xf32>
    %159 = math.exp %158 : vector<8x96xf32>
    %cst_28 = arith.constant 1.000000e+00 : f32
    %160 = vector.broadcast %cst_28 : f32 to vector<8x96xf32>
    %161 = arith.addf %160, %159 : vector<8x96xf32>
    %162 = arith.divf %160, %161 : vector<8x96xf32>
    %163 = vector.extract_strided_slice %140 {offsets = [0, 96], sizes = [8, 32], strides = [1, 1]} : vector<8x128xf32> to vector<8x32xf32>
    %164 = math.tanh %163 : vector<8x32xf32>
    %165 = vector.extract_strided_slice %162 {offsets = [0, 0], sizes = [8, 32], strides = [1, 1]} : vector<8x96xf32> to vector<8x32xf32>
    %166 = vector.extract_strided_slice %162 {offsets = [0, 32], sizes = [8, 32], strides = [1, 1]} : vector<8x96xf32> to vector<8x32xf32>
    %167 = vector.extract_strided_slice %162 {offsets = [0, 64], sizes = [8, 32], strides = [1, 1]} : vector<8x96xf32> to vector<8x32xf32>
    %168 = arith.mulf %166, %130 : vector<8x32xf32>
    %169 = arith.mulf %165, %164 : vector<8x32xf32>
    %170 = arith.addf %168, %169 : vector<8x32xf32>
    %171 = math.tanh %170 : vector<8x32xf32>
    %172 = arith.mulf %167, %171 : vector<8x32xf32>
    %173 = arith.truncf %156 : vector<8x32xf32> to vector<8x32xbf16>
    %cst_29 = arith.constant dense<0.000000e+00> : vector<8x128xf32>
    %174 = tpu.matmul %173, %7, %cst_29 {dimension_numbers = #tpu.dot_dimension_numbers<[1], [0], [0], [1], [0, 0, 1, 1], [], []>} : vector<8x32xbf16>, vector<32x128xbf16>, vector<8x128xf32> -> vector<8x128xf32>
    %175 = arith.truncf %172 : vector<8x32xf32> to vector<8x32xbf16>
    %cst_30 = arith.constant dense<0.000000e+00> : vector<8x128xf32>
    %176 = tpu.matmul %175, %8, %cst_30 {dimension_numbers = #tpu.dot_dimension_numbers<[1], [0], [0], [1], [0, 0, 1, 1], [], []>} : vector<8x32xbf16>, vector<32x128xbf16>, vector<8x128xf32> -> vector<8x128xf32>
    %177 = vector.extract_strided_slice %6 {offsets = [32, 0], sizes = [8, 128], strides = [1, 1]} : vector<64x256xf32> to vector<8x128xf32>
    %178 = arith.addf %177, %174 : vector<8x128xf32>
    %179 = vector.extract_strided_slice %6 {offsets = [24, 128], sizes = [8, 128], strides = [1, 1]} : vector<64x256xf32> to vector<8x128xf32>
    %180 = arith.addf %179, %176 : vector<8x128xf32>
    %181 = vector.extract_strided_slice %178 {offsets = [0, 0], sizes = [8, 96], strides = [1, 1]} : vector<8x128xf32> to vector<8x96xf32>
    %182 = arith.negf %181 : vector<8x96xf32>
    %183 = math.exp %182 : vector<8x96xf32>
    %cst_31 = arith.constant 1.000000e+00 : f32
    %184 = vector.broadcast %cst_31 : f32 to vector<8x96xf32>
    %185 = arith.addf %184, %183 : vector<8x96xf32>
    %186 = arith.divf %184, %185 : vector<8x96xf32>
    %187 = vector.extract_strided_slice %178 {offsets = [0, 96], sizes = [8, 32], strides = [1, 1]} : vector<8x128xf32> to vector<8x32xf32>
    %188 = math.tanh %187 : vector<8x32xf32>
    %189 = vector.extract_strided_slice %186 {offsets = [0, 0], sizes = [8, 32], strides = [1, 1]} : vector<8x96xf32> to vector<8x32xf32>
    %190 = vector.extract_strided_slice %186 {offsets = [0, 32], sizes = [8, 32], strides = [1, 1]} : vector<8x96xf32> to vector<8x32xf32>
    %191 = vector.extract_strided_slice %186 {offsets = [0, 64], sizes = [8, 32], strides = [1, 1]} : vector<8x96xf32> to vector<8x32xf32>
    %192 = arith.mulf %190, %154 : vector<8x32xf32>
    %193 = arith.mulf %189, %188 : vector<8x32xf32>
    %194 = arith.addf %192, %193 : vector<8x32xf32>
    %195 = math.tanh %194 : vector<8x32xf32>
    %196 = arith.mulf %191, %195 : vector<8x32xf32>
    %197 = vector.extract_strided_slice %180 {offsets = [0, 0], sizes = [8, 96], strides = [1, 1]} : vector<8x128xf32> to vector<8x96xf32>
    %198 = arith.negf %197 : vector<8x96xf32>
    %199 = math.exp %198 : vector<8x96xf32>
    %cst_32 = arith.constant 1.000000e+00 : f32
    %200 = vector.broadcast %cst_32 : f32 to vector<8x96xf32>
    %201 = arith.addf %200, %199 : vector<8x96xf32>
    %202 = arith.divf %200, %201 : vector<8x96xf32>
    %203 = vector.extract_strided_slice %180 {offsets = [0, 96], sizes = [8, 32], strides = [1, 1]} : vector<8x128xf32> to vector<8x32xf32>
    %204 = math.tanh %203 : vector<8x32xf32>
    %205 = vector.extract_strided_slice %202 {offsets = [0, 0], sizes = [8, 32], strides = [1, 1]} : vector<8x96xf32> to vector<8x32xf32>
    %206 = vector.extract_strided_slice %202 {offsets = [0, 32], sizes = [8, 32], strides = [1, 1]} : vector<8x96xf32> to vector<8x32xf32>
    %207 = vector.extract_strided_slice %202 {offsets = [0, 64], sizes = [8, 32], strides = [1, 1]} : vector<8x96xf32> to vector<8x32xf32>
    %208 = arith.mulf %206, %170 : vector<8x32xf32>
    %209 = arith.mulf %205, %204 : vector<8x32xf32>
    %210 = arith.addf %208, %209 : vector<8x32xf32>
    %211 = math.tanh %210 : vector<8x32xf32>
    %212 = arith.mulf %207, %211 : vector<8x32xf32>
    %213 = arith.truncf %196 : vector<8x32xf32> to vector<8x32xbf16>
    %cst_33 = arith.constant dense<0.000000e+00> : vector<8x128xf32>
    %214 = tpu.matmul %213, %7, %cst_33 {dimension_numbers = #tpu.dot_dimension_numbers<[1], [0], [0], [1], [0, 0, 1, 1], [], []>} : vector<8x32xbf16>, vector<32x128xbf16>, vector<8x128xf32> -> vector<8x128xf32>
    %215 = arith.truncf %212 : vector<8x32xf32> to vector<8x32xbf16>
    %cst_34 = arith.constant dense<0.000000e+00> : vector<8x128xf32>
    %216 = tpu.matmul %215, %8, %cst_34 {dimension_numbers = #tpu.dot_dimension_numbers<[1], [0], [0], [1], [0, 0, 1, 1], [], []>} : vector<8x32xbf16>, vector<32x128xbf16>, vector<8x128xf32> -> vector<8x128xf32>
    %217 = vector.extract_strided_slice %6 {offsets = [40, 0], sizes = [8, 128], strides = [1, 1]} : vector<64x256xf32> to vector<8x128xf32>
    %218 = arith.addf %217, %214 : vector<8x128xf32>
    %219 = vector.extract_strided_slice %6 {offsets = [16, 128], sizes = [8, 128], strides = [1, 1]} : vector<64x256xf32> to vector<8x128xf32>
    %220 = arith.addf %219, %216 : vector<8x128xf32>
    %221 = vector.extract_strided_slice %218 {offsets = [0, 0], sizes = [8, 96], strides = [1, 1]} : vector<8x128xf32> to vector<8x96xf32>
    %222 = arith.negf %221 : vector<8x96xf32>
    %223 = math.exp %222 : vector<8x96xf32>
    %cst_35 = arith.constant 1.000000e+00 : f32
    %224 = vector.broadcast %cst_35 : f32 to vector<8x96xf32>
    %225 = arith.addf %224, %223 : vector<8x96xf32>
    %226 = arith.divf %224, %225 : vector<8x96xf32>
    %227 = vector.extract_strided_slice %218 {offsets = [0, 96], sizes = [8, 32], strides = [1, 1]} : vector<8x128xf32> to vector<8x32xf32>
    %228 = math.tanh %227 : vector<8x32xf32>
    %229 = vector.extract_strided_slice %226 {offsets = [0, 0], sizes = [8, 32], strides = [1, 1]} : vector<8x96xf32> to vector<8x32xf32>
    %230 = vector.extract_strided_slice %226 {offsets = [0, 32], sizes = [8, 32], strides = [1, 1]} : vector<8x96xf32> to vector<8x32xf32>
    %231 = vector.extract_strided_slice %226 {offsets = [0, 64], sizes = [8, 32], strides = [1, 1]} : vector<8x96xf32> to vector<8x32xf32>
    %232 = arith.mulf %230, %194 : vector<8x32xf32>
    %233 = arith.mulf %229, %228 : vector<8x32xf32>
    %234 = arith.addf %232, %233 : vector<8x32xf32>
    %235 = math.tanh %234 : vector<8x32xf32>
    %236 = arith.mulf %231, %235 : vector<8x32xf32>
    %237 = vector.extract_strided_slice %220 {offsets = [0, 0], sizes = [8, 96], strides = [1, 1]} : vector<8x128xf32> to vector<8x96xf32>
    %238 = arith.negf %237 : vector<8x96xf32>
    %239 = math.exp %238 : vector<8x96xf32>
    %cst_36 = arith.constant 1.000000e+00 : f32
    %240 = vector.broadcast %cst_36 : f32 to vector<8x96xf32>
    %241 = arith.addf %240, %239 : vector<8x96xf32>
    %242 = arith.divf %240, %241 : vector<8x96xf32>
    %243 = vector.extract_strided_slice %220 {offsets = [0, 96], sizes = [8, 32], strides = [1, 1]} : vector<8x128xf32> to vector<8x32xf32>
    %244 = math.tanh %243 : vector<8x32xf32>
    %245 = vector.extract_strided_slice %242 {offsets = [0, 0], sizes = [8, 32], strides = [1, 1]} : vector<8x96xf32> to vector<8x32xf32>
    %246 = vector.extract_strided_slice %242 {offsets = [0, 32], sizes = [8, 32], strides = [1, 1]} : vector<8x96xf32> to vector<8x32xf32>
    %247 = vector.extract_strided_slice %242 {offsets = [0, 64], sizes = [8, 32], strides = [1, 1]} : vector<8x96xf32> to vector<8x32xf32>
    %248 = arith.mulf %246, %210 : vector<8x32xf32>
    %249 = arith.mulf %245, %244 : vector<8x32xf32>
    %250 = arith.addf %248, %249 : vector<8x32xf32>
    %251 = math.tanh %250 : vector<8x32xf32>
    %252 = arith.mulf %247, %251 : vector<8x32xf32>
    %253 = arith.truncf %236 : vector<8x32xf32> to vector<8x32xbf16>
    %cst_37 = arith.constant dense<0.000000e+00> : vector<8x128xf32>
    %254 = tpu.matmul %253, %7, %cst_37 {dimension_numbers = #tpu.dot_dimension_numbers<[1], [0], [0], [1], [0, 0, 1, 1], [], []>} : vector<8x32xbf16>, vector<32x128xbf16>, vector<8x128xf32> -> vector<8x128xf32>
    %255 = arith.truncf %252 : vector<8x32xf32> to vector<8x32xbf16>
    %cst_38 = arith.constant dense<0.000000e+00> : vector<8x128xf32>
    %256 = tpu.matmul %255, %8, %cst_38 {dimension_numbers = #tpu.dot_dimension_numbers<[1], [0], [0], [1], [0, 0, 1, 1], [], []>} : vector<8x32xbf16>, vector<32x128xbf16>, vector<8x128xf32> -> vector<8x128xf32>
    %257 = vector.extract_strided_slice %6 {offsets = [48, 0], sizes = [8, 128], strides = [1, 1]} : vector<64x256xf32> to vector<8x128xf32>
    %258 = arith.addf %257, %254 : vector<8x128xf32>
    %259 = vector.extract_strided_slice %6 {offsets = [8, 128], sizes = [8, 128], strides = [1, 1]} : vector<64x256xf32> to vector<8x128xf32>
    %260 = arith.addf %259, %256 : vector<8x128xf32>
    %261 = vector.extract_strided_slice %258 {offsets = [0, 0], sizes = [8, 96], strides = [1, 1]} : vector<8x128xf32> to vector<8x96xf32>
    %262 = arith.negf %261 : vector<8x96xf32>
    %263 = math.exp %262 : vector<8x96xf32>
    %cst_39 = arith.constant 1.000000e+00 : f32
    %264 = vector.broadcast %cst_39 : f32 to vector<8x96xf32>
    %265 = arith.addf %264, %263 : vector<8x96xf32>
    %266 = arith.divf %264, %265 : vector<8x96xf32>
    %267 = vector.extract_strided_slice %258 {offsets = [0, 96], sizes = [8, 32], strides = [1, 1]} : vector<8x128xf32> to vector<8x32xf32>
    %268 = math.tanh %267 : vector<8x32xf32>
    %269 = vector.extract_strided_slice %266 {offsets = [0, 0], sizes = [8, 32], strides = [1, 1]} : vector<8x96xf32> to vector<8x32xf32>
    %270 = vector.extract_strided_slice %266 {offsets = [0, 32], sizes = [8, 32], strides = [1, 1]} : vector<8x96xf32> to vector<8x32xf32>
    %271 = vector.extract_strided_slice %266 {offsets = [0, 64], sizes = [8, 32], strides = [1, 1]} : vector<8x96xf32> to vector<8x32xf32>
    %272 = arith.mulf %270, %234 : vector<8x32xf32>
    %273 = arith.mulf %269, %268 : vector<8x32xf32>
    %274 = arith.addf %272, %273 : vector<8x32xf32>
    %275 = math.tanh %274 : vector<8x32xf32>
    %276 = arith.mulf %271, %275 : vector<8x32xf32>
    %277 = vector.extract_strided_slice %260 {offsets = [0, 0], sizes = [8, 96], strides = [1, 1]} : vector<8x128xf32> to vector<8x96xf32>
    %278 = arith.negf %277 : vector<8x96xf32>
    %279 = math.exp %278 : vector<8x96xf32>
    %cst_40 = arith.constant 1.000000e+00 : f32
    %280 = vector.broadcast %cst_40 : f32 to vector<8x96xf32>
    %281 = arith.addf %280, %279 : vector<8x96xf32>
    %282 = arith.divf %280, %281 : vector<8x96xf32>
    %283 = vector.extract_strided_slice %260 {offsets = [0, 96], sizes = [8, 32], strides = [1, 1]} : vector<8x128xf32> to vector<8x32xf32>
    %284 = math.tanh %283 : vector<8x32xf32>
    %285 = vector.extract_strided_slice %282 {offsets = [0, 0], sizes = [8, 32], strides = [1, 1]} : vector<8x96xf32> to vector<8x32xf32>
    %286 = vector.extract_strided_slice %282 {offsets = [0, 32], sizes = [8, 32], strides = [1, 1]} : vector<8x96xf32> to vector<8x32xf32>
    %287 = vector.extract_strided_slice %282 {offsets = [0, 64], sizes = [8, 32], strides = [1, 1]} : vector<8x96xf32> to vector<8x32xf32>
    %288 = arith.mulf %286, %250 : vector<8x32xf32>
    %289 = arith.mulf %285, %284 : vector<8x32xf32>
    %290 = arith.addf %288, %289 : vector<8x32xf32>
    %291 = math.tanh %290 : vector<8x32xf32>
    %292 = arith.mulf %287, %291 : vector<8x32xf32>
    %293 = arith.truncf %276 : vector<8x32xf32> to vector<8x32xbf16>
    %cst_41 = arith.constant dense<0.000000e+00> : vector<8x128xf32>
    %294 = tpu.matmul %293, %7, %cst_41 {dimension_numbers = #tpu.dot_dimension_numbers<[1], [0], [0], [1], [0, 0, 1, 1], [], []>} : vector<8x32xbf16>, vector<32x128xbf16>, vector<8x128xf32> -> vector<8x128xf32>
    %295 = arith.truncf %292 : vector<8x32xf32> to vector<8x32xbf16>
    %cst_42 = arith.constant dense<0.000000e+00> : vector<8x128xf32>
    %296 = tpu.matmul %295, %8, %cst_42 {dimension_numbers = #tpu.dot_dimension_numbers<[1], [0], [0], [1], [0, 0, 1, 1], [], []>} : vector<8x32xbf16>, vector<32x128xbf16>, vector<8x128xf32> -> vector<8x128xf32>
    %297 = vector.extract_strided_slice %6 {offsets = [56, 0], sizes = [8, 128], strides = [1, 1]} : vector<64x256xf32> to vector<8x128xf32>
    %298 = arith.addf %297, %294 : vector<8x128xf32>
    %299 = vector.extract_strided_slice %6 {offsets = [0, 128], sizes = [8, 128], strides = [1, 1]} : vector<64x256xf32> to vector<8x128xf32>
    %300 = arith.addf %299, %296 : vector<8x128xf32>
    %301 = vector.extract_strided_slice %298 {offsets = [0, 0], sizes = [8, 96], strides = [1, 1]} : vector<8x128xf32> to vector<8x96xf32>
    %302 = arith.negf %301 : vector<8x96xf32>
    %303 = math.exp %302 : vector<8x96xf32>
    %cst_43 = arith.constant 1.000000e+00 : f32
    %304 = vector.broadcast %cst_43 : f32 to vector<8x96xf32>
    %305 = arith.addf %304, %303 : vector<8x96xf32>
    %306 = arith.divf %304, %305 : vector<8x96xf32>
    %307 = vector.extract_strided_slice %298 {offsets = [0, 96], sizes = [8, 32], strides = [1, 1]} : vector<8x128xf32> to vector<8x32xf32>
    %308 = math.tanh %307 : vector<8x32xf32>
    %309 = vector.extract_strided_slice %306 {offsets = [0, 0], sizes = [8, 32], strides = [1, 1]} : vector<8x96xf32> to vector<8x32xf32>
    %310 = vector.extract_strided_slice %306 {offsets = [0, 32], sizes = [8, 32], strides = [1, 1]} : vector<8x96xf32> to vector<8x32xf32>
    %311 = vector.extract_strided_slice %306 {offsets = [0, 64], sizes = [8, 32], strides = [1, 1]} : vector<8x96xf32> to vector<8x32xf32>
    %312 = arith.mulf %310, %274 : vector<8x32xf32>
    %313 = arith.mulf %309, %308 : vector<8x32xf32>
    %314 = arith.addf %312, %313 : vector<8x32xf32>
    %315 = math.tanh %314 : vector<8x32xf32>
    %316 = arith.mulf %311, %315 : vector<8x32xf32>
    %317 = vector.extract_strided_slice %300 {offsets = [0, 0], sizes = [8, 96], strides = [1, 1]} : vector<8x128xf32> to vector<8x96xf32>
    %318 = arith.negf %317 : vector<8x96xf32>
    %319 = math.exp %318 : vector<8x96xf32>
    %cst_44 = arith.constant 1.000000e+00 : f32
    %320 = vector.broadcast %cst_44 : f32 to vector<8x96xf32>
    %321 = arith.addf %320, %319 : vector<8x96xf32>
    %322 = arith.divf %320, %321 : vector<8x96xf32>
    %323 = vector.extract_strided_slice %300 {offsets = [0, 96], sizes = [8, 32], strides = [1, 1]} : vector<8x128xf32> to vector<8x32xf32>
    %324 = math.tanh %323 : vector<8x32xf32>
    %325 = vector.extract_strided_slice %322 {offsets = [0, 0], sizes = [8, 32], strides = [1, 1]} : vector<8x96xf32> to vector<8x32xf32>
    %326 = vector.extract_strided_slice %322 {offsets = [0, 32], sizes = [8, 32], strides = [1, 1]} : vector<8x96xf32> to vector<8x32xf32>
    %327 = vector.extract_strided_slice %322 {offsets = [0, 64], sizes = [8, 32], strides = [1, 1]} : vector<8x96xf32> to vector<8x32xf32>
    %328 = arith.mulf %326, %290 : vector<8x32xf32>
    %329 = arith.mulf %325, %324 : vector<8x32xf32>
    %330 = arith.addf %328, %329 : vector<8x32xf32>
    %331 = math.tanh %330 : vector<8x32xf32>
    %332 = arith.mulf %327, %331 : vector<8x32xf32>
    %333 = tpu.concatenate %36, %76, %116, %156, %196, %236, %276, %316 in 0 : vector<8x32xf32>, vector<8x32xf32>, vector<8x32xf32>, vector<8x32xf32>, vector<8x32xf32>, vector<8x32xf32>, vector<8x32xf32>, vector<8x32xf32> -> vector<64x32xf32>
    %334 = tpu.concatenate %332, %292, %252, %212, %172, %132, %92, %52 in 0 : vector<8x32xf32>, vector<8x32xf32>, vector<8x32xf32>, vector<8x32xf32>, vector<8x32xf32>, vector<8x32xf32>, vector<8x32xf32>, vector<8x32xf32> -> vector<64x32xf32>
    %335 = arith.truncf %333 : vector<64x32xf32> to vector<64x32xbf16>
    %c0_45 = arith.constant 0 : index
    %c0_46 = arith.constant 0 : index
    %336 = vector.load %arg5[%c0_45, %c0_46] : memref<32x256xbf16, #tpu.memory_space<vmem>>, vector<32x256xbf16>
    %cst_47 = arith.constant dense<0.000000e+00> : vector<64x256xf32>
    %337 = tpu.matmul %335, %336, %cst_47 {dimension_numbers = #tpu.dot_dimension_numbers<[1], [0], [0], [1], [0, 0, 1, 1], [], []>} : vector<64x32xbf16>, vector<32x256xbf16>, vector<64x256xf32> -> vector<64x256xf32>
    %338 = arith.truncf %334 : vector<64x32xf32> to vector<64x32xbf16>
    %c0_48 = arith.constant 0 : index
    %c0_49 = arith.constant 0 : index
    %339 = vector.load %arg6[%c0_48, %c0_49] : memref<32x256xbf16, #tpu.memory_space<vmem>>, vector<32x256xbf16>
    %cst_50 = arith.constant dense<0.000000e+00> : vector<64x256xf32>
    %340 = tpu.matmul %338, %339, %cst_50 {dimension_numbers = #tpu.dot_dimension_numbers<[1], [0], [0], [1], [0, 0, 1, 1], [], []>} : vector<64x32xbf16>, vector<32x256xbf16>, vector<64x256xf32> -> vector<64x256xf32>
    %341 = arith.addf %337, %340 : vector<64x256xf32>
    %c0_51 = arith.constant 0 : index
    %c0_52 = arith.constant 0 : index
    %342 = vector.load %arg7[%c0_51, %c0_52] : memref<1x256xf32, #tpu.memory_space<vmem>>, vector<1x256xf32>
    %343 = vector.broadcast %342 : vector<1x256xf32> to vector<64x256xf32>
    %344 = arith.addf %341, %343 : vector<64x256xf32>
    %c0_53 = arith.constant 0 : index
    %c0_54 = arith.constant 0 : index
    %345 = vector.load %arg8[%c0_53, %c0_54] : memref<32x128xbf16, #tpu.memory_space<vmem>>, vector<32x128xbf16>
    %c0_55 = arith.constant 0 : index
    %c0_56 = arith.constant 0 : index
    %346 = vector.load %arg9[%c0_55, %c0_56] : memref<32x128xbf16, #tpu.memory_space<vmem>>, vector<32x128xbf16>
    %cst_57 = arith.constant 0.000000e+00 : f32
    %347 = vector.broadcast %cst_57 : f32 to vector<8x32xf32>
    %cst_58 = arith.constant 0.000000e+00 : f32
    %348 = vector.broadcast %cst_58 : f32 to vector<8x32xf32>
    %cst_59 = arith.constant 0.000000e+00 : f32
    %349 = vector.broadcast %cst_59 : f32 to vector<8x32xf32>
    %cst_60 = arith.constant 0.000000e+00 : f32
    %350 = vector.broadcast %cst_60 : f32 to vector<8x32xf32>
    %351 = arith.truncf %347 : vector<8x32xf32> to vector<8x32xbf16>
    %cst_61 = arith.constant dense<0.000000e+00> : vector<8x128xf32>
    %352 = tpu.matmul %351, %345, %cst_61 {dimension_numbers = #tpu.dot_dimension_numbers<[1], [0], [0], [1], [0, 0, 1, 1], [], []>} : vector<8x32xbf16>, vector<32x128xbf16>, vector<8x128xf32> -> vector<8x128xf32>
    %353 = arith.truncf %348 : vector<8x32xf32> to vector<8x32xbf16>
    %cst_62 = arith.constant dense<0.000000e+00> : vector<8x128xf32>
    %354 = tpu.matmul %353, %346, %cst_62 {dimension_numbers = #tpu.dot_dimension_numbers<[1], [0], [0], [1], [0, 0, 1, 1], [], []>} : vector<8x32xbf16>, vector<32x128xbf16>, vector<8x128xf32> -> vector<8x128xf32>
    %355 = vector.extract_strided_slice %344 {offsets = [0, 0], sizes = [8, 128], strides = [1, 1]} : vector<64x256xf32> to vector<8x128xf32>
    %356 = arith.addf %355, %352 : vector<8x128xf32>
    %357 = vector.extract_strided_slice %344 {offsets = [56, 128], sizes = [8, 128], strides = [1, 1]} : vector<64x256xf32> to vector<8x128xf32>
    %358 = arith.addf %357, %354 : vector<8x128xf32>
    %359 = vector.extract_strided_slice %356 {offsets = [0, 0], sizes = [8, 96], strides = [1, 1]} : vector<8x128xf32> to vector<8x96xf32>
    %360 = arith.negf %359 : vector<8x96xf32>
    %361 = math.exp %360 : vector<8x96xf32>
    %cst_63 = arith.constant 1.000000e+00 : f32
    %362 = vector.broadcast %cst_63 : f32 to vector<8x96xf32>
    %363 = arith.addf %362, %361 : vector<8x96xf32>
    %364 = arith.divf %362, %363 : vector<8x96xf32>
    %365 = vector.extract_strided_slice %356 {offsets = [0, 96], sizes = [8, 32], strides = [1, 1]} : vector<8x128xf32> to vector<8x32xf32>
    %366 = math.tanh %365 : vector<8x32xf32>
    %367 = vector.extract_strided_slice %364 {offsets = [0, 0], sizes = [8, 32], strides = [1, 1]} : vector<8x96xf32> to vector<8x32xf32>
    %368 = vector.extract_strided_slice %364 {offsets = [0, 32], sizes = [8, 32], strides = [1, 1]} : vector<8x96xf32> to vector<8x32xf32>
    %369 = vector.extract_strided_slice %364 {offsets = [0, 64], sizes = [8, 32], strides = [1, 1]} : vector<8x96xf32> to vector<8x32xf32>
    %370 = arith.mulf %368, %349 : vector<8x32xf32>
    %371 = arith.mulf %367, %366 : vector<8x32xf32>
    %372 = arith.addf %370, %371 : vector<8x32xf32>
    %373 = math.tanh %372 : vector<8x32xf32>
    %374 = arith.mulf %369, %373 : vector<8x32xf32>
    %375 = vector.extract_strided_slice %358 {offsets = [0, 0], sizes = [8, 96], strides = [1, 1]} : vector<8x128xf32> to vector<8x96xf32>
    %376 = arith.negf %375 : vector<8x96xf32>
    %377 = math.exp %376 : vector<8x96xf32>
    %cst_64 = arith.constant 1.000000e+00 : f32
    %378 = vector.broadcast %cst_64 : f32 to vector<8x96xf32>
    %379 = arith.addf %378, %377 : vector<8x96xf32>
    %380 = arith.divf %378, %379 : vector<8x96xf32>
    %381 = vector.extract_strided_slice %358 {offsets = [0, 96], sizes = [8, 32], strides = [1, 1]} : vector<8x128xf32> to vector<8x32xf32>
    %382 = math.tanh %381 : vector<8x32xf32>
    %383 = vector.extract_strided_slice %380 {offsets = [0, 0], sizes = [8, 32], strides = [1, 1]} : vector<8x96xf32> to vector<8x32xf32>
    %384 = vector.extract_strided_slice %380 {offsets = [0, 32], sizes = [8, 32], strides = [1, 1]} : vector<8x96xf32> to vector<8x32xf32>
    %385 = vector.extract_strided_slice %380 {offsets = [0, 64], sizes = [8, 32], strides = [1, 1]} : vector<8x96xf32> to vector<8x32xf32>
    %386 = arith.mulf %384, %350 : vector<8x32xf32>
    %387 = arith.mulf %383, %382 : vector<8x32xf32>
    %388 = arith.addf %386, %387 : vector<8x32xf32>
    %389 = math.tanh %388 : vector<8x32xf32>
    %390 = arith.mulf %385, %389 : vector<8x32xf32>
    %391 = arith.truncf %374 : vector<8x32xf32> to vector<8x32xbf16>
    %cst_65 = arith.constant dense<0.000000e+00> : vector<8x128xf32>
    %392 = tpu.matmul %391, %345, %cst_65 {dimension_numbers = #tpu.dot_dimension_numbers<[1], [0], [0], [1], [0, 0, 1, 1], [], []>} : vector<8x32xbf16>, vector<32x128xbf16>, vector<8x128xf32> -> vector<8x128xf32>
    %393 = vector.extract_strided_slice %344 {offsets = [8, 0], sizes = [8, 128], strides = [1, 1]} : vector<64x256xf32> to vector<8x128xf32>
    %394 = arith.addf %393, %392 : vector<8x128xf32>
    %395 = vector.extract_strided_slice %394 {offsets = [0, 0], sizes = [8, 96], strides = [1, 1]} : vector<8x128xf32> to vector<8x96xf32>
    %396 = arith.negf %395 : vector<8x96xf32>
    %397 = math.exp %396 : vector<8x96xf32>
    %cst_66 = arith.constant 1.000000e+00 : f32
    %398 = vector.broadcast %cst_66 : f32 to vector<8x96xf32>
    %399 = arith.addf %398, %397 : vector<8x96xf32>
    %400 = arith.divf %398, %399 : vector<8x96xf32>
    %401 = vector.extract_strided_slice %394 {offsets = [0, 96], sizes = [8, 32], strides = [1, 1]} : vector<8x128xf32> to vector<8x32xf32>
    %402 = math.tanh %401 : vector<8x32xf32>
    %403 = vector.extract_strided_slice %400 {offsets = [0, 0], sizes = [8, 32], strides = [1, 1]} : vector<8x96xf32> to vector<8x32xf32>
    %404 = vector.extract_strided_slice %400 {offsets = [0, 32], sizes = [8, 32], strides = [1, 1]} : vector<8x96xf32> to vector<8x32xf32>
    %405 = vector.extract_strided_slice %400 {offsets = [0, 64], sizes = [8, 32], strides = [1, 1]} : vector<8x96xf32> to vector<8x32xf32>
    %406 = arith.mulf %404, %372 : vector<8x32xf32>
    %407 = arith.mulf %403, %402 : vector<8x32xf32>
    %408 = arith.addf %406, %407 : vector<8x32xf32>
    %409 = math.tanh %408 : vector<8x32xf32>
    %410 = arith.mulf %405, %409 : vector<8x32xf32>
    %411 = arith.truncf %410 : vector<8x32xf32> to vector<8x32xbf16>
    %cst_67 = arith.constant dense<0.000000e+00> : vector<8x128xf32>
    %412 = tpu.matmul %411, %345, %cst_67 {dimension_numbers = #tpu.dot_dimension_numbers<[1], [0], [0], [1], [0, 0, 1, 1], [], []>} : vector<8x32xbf16>, vector<32x128xbf16>, vector<8x128xf32> -> vector<8x128xf32>
    %413 = vector.extract_strided_slice %344 {offsets = [16, 0], sizes = [8, 128], strides = [1, 1]} : vector<64x256xf32> to vector<8x128xf32>
    %414 = arith.addf %413, %412 : vector<8x128xf32>
    %415 = vector.extract_strided_slice %414 {offsets = [0, 0], sizes = [8, 96], strides = [1, 1]} : vector<8x128xf32> to vector<8x96xf32>
    %416 = arith.negf %415 : vector<8x96xf32>
    %417 = math.exp %416 : vector<8x96xf32>
    %cst_68 = arith.constant 1.000000e+00 : f32
    %418 = vector.broadcast %cst_68 : f32 to vector<8x96xf32>
    %419 = arith.addf %418, %417 : vector<8x96xf32>
    %420 = arith.divf %418, %419 : vector<8x96xf32>
    %421 = vector.extract_strided_slice %414 {offsets = [0, 96], sizes = [8, 32], strides = [1, 1]} : vector<8x128xf32> to vector<8x32xf32>
    %422 = math.tanh %421 : vector<8x32xf32>
    %423 = vector.extract_strided_slice %420 {offsets = [0, 0], sizes = [8, 32], strides = [1, 1]} : vector<8x96xf32> to vector<8x32xf32>
    %424 = vector.extract_strided_slice %420 {offsets = [0, 32], sizes = [8, 32], strides = [1, 1]} : vector<8x96xf32> to vector<8x32xf32>
    %425 = vector.extract_strided_slice %420 {offsets = [0, 64], sizes = [8, 32], strides = [1, 1]} : vector<8x96xf32> to vector<8x32xf32>
    %426 = arith.mulf %424, %408 : vector<8x32xf32>
    %427 = arith.mulf %423, %422 : vector<8x32xf32>
    %428 = arith.addf %426, %427 : vector<8x32xf32>
    %429 = math.tanh %428 : vector<8x32xf32>
    %430 = arith.mulf %425, %429 : vector<8x32xf32>
    %431 = arith.truncf %430 : vector<8x32xf32> to vector<8x32xbf16>
    %cst_69 = arith.constant dense<0.000000e+00> : vector<8x128xf32>
    %432 = tpu.matmul %431, %345, %cst_69 {dimension_numbers = #tpu.dot_dimension_numbers<[1], [0], [0], [1], [0, 0, 1, 1], [], []>} : vector<8x32xbf16>, vector<32x128xbf16>, vector<8x128xf32> -> vector<8x128xf32>
    %433 = vector.extract_strided_slice %344 {offsets = [24, 0], sizes = [8, 128], strides = [1, 1]} : vector<64x256xf32> to vector<8x128xf32>
    %434 = arith.addf %433, %432 : vector<8x128xf32>
    %435 = vector.extract_strided_slice %434 {offsets = [0, 0], sizes = [8, 96], strides = [1, 1]} : vector<8x128xf32> to vector<8x96xf32>
    %436 = arith.negf %435 : vector<8x96xf32>
    %437 = math.exp %436 : vector<8x96xf32>
    %cst_70 = arith.constant 1.000000e+00 : f32
    %438 = vector.broadcast %cst_70 : f32 to vector<8x96xf32>
    %439 = arith.addf %438, %437 : vector<8x96xf32>
    %440 = arith.divf %438, %439 : vector<8x96xf32>
    %441 = vector.extract_strided_slice %434 {offsets = [0, 96], sizes = [8, 32], strides = [1, 1]} : vector<8x128xf32> to vector<8x32xf32>
    %442 = math.tanh %441 : vector<8x32xf32>
    %443 = vector.extract_strided_slice %440 {offsets = [0, 0], sizes = [8, 32], strides = [1, 1]} : vector<8x96xf32> to vector<8x32xf32>
    %444 = vector.extract_strided_slice %440 {offsets = [0, 32], sizes = [8, 32], strides = [1, 1]} : vector<8x96xf32> to vector<8x32xf32>
    %445 = vector.extract_strided_slice %440 {offsets = [0, 64], sizes = [8, 32], strides = [1, 1]} : vector<8x96xf32> to vector<8x32xf32>
    %446 = arith.mulf %444, %428 : vector<8x32xf32>
    %447 = arith.mulf %443, %442 : vector<8x32xf32>
    %448 = arith.addf %446, %447 : vector<8x32xf32>
    %449 = math.tanh %448 : vector<8x32xf32>
    %450 = arith.mulf %445, %449 : vector<8x32xf32>
    %451 = arith.truncf %450 : vector<8x32xf32> to vector<8x32xbf16>
    %cst_71 = arith.constant dense<0.000000e+00> : vector<8x128xf32>
    %452 = tpu.matmul %451, %345, %cst_71 {dimension_numbers = #tpu.dot_dimension_numbers<[1], [0], [0], [1], [0, 0, 1, 1], [], []>} : vector<8x32xbf16>, vector<32x128xbf16>, vector<8x128xf32> -> vector<8x128xf32>
    %453 = vector.extract_strided_slice %344 {offsets = [32, 0], sizes = [8, 128], strides = [1, 1]} : vector<64x256xf32> to vector<8x128xf32>
    %454 = arith.addf %453, %452 : vector<8x128xf32>
    %455 = vector.extract_strided_slice %454 {offsets = [0, 0], sizes = [8, 96], strides = [1, 1]} : vector<8x128xf32> to vector<8x96xf32>
    %456 = arith.negf %455 : vector<8x96xf32>
    %457 = math.exp %456 : vector<8x96xf32>
    %cst_72 = arith.constant 1.000000e+00 : f32
    %458 = vector.broadcast %cst_72 : f32 to vector<8x96xf32>
    %459 = arith.addf %458, %457 : vector<8x96xf32>
    %460 = arith.divf %458, %459 : vector<8x96xf32>
    %461 = vector.extract_strided_slice %454 {offsets = [0, 96], sizes = [8, 32], strides = [1, 1]} : vector<8x128xf32> to vector<8x32xf32>
    %462 = math.tanh %461 : vector<8x32xf32>
    %463 = vector.extract_strided_slice %460 {offsets = [0, 0], sizes = [8, 32], strides = [1, 1]} : vector<8x96xf32> to vector<8x32xf32>
    %464 = vector.extract_strided_slice %460 {offsets = [0, 32], sizes = [8, 32], strides = [1, 1]} : vector<8x96xf32> to vector<8x32xf32>
    %465 = vector.extract_strided_slice %460 {offsets = [0, 64], sizes = [8, 32], strides = [1, 1]} : vector<8x96xf32> to vector<8x32xf32>
    %466 = arith.mulf %464, %448 : vector<8x32xf32>
    %467 = arith.mulf %463, %462 : vector<8x32xf32>
    %468 = arith.addf %466, %467 : vector<8x32xf32>
    %469 = math.tanh %468 : vector<8x32xf32>
    %470 = arith.mulf %465, %469 : vector<8x32xf32>
    %471 = arith.truncf %470 : vector<8x32xf32> to vector<8x32xbf16>
    %cst_73 = arith.constant dense<0.000000e+00> : vector<8x128xf32>
    %472 = tpu.matmul %471, %345, %cst_73 {dimension_numbers = #tpu.dot_dimension_numbers<[1], [0], [0], [1], [0, 0, 1, 1], [], []>} : vector<8x32xbf16>, vector<32x128xbf16>, vector<8x128xf32> -> vector<8x128xf32>
    %473 = vector.extract_strided_slice %344 {offsets = [40, 0], sizes = [8, 128], strides = [1, 1]} : vector<64x256xf32> to vector<8x128xf32>
    %474 = arith.addf %473, %472 : vector<8x128xf32>
    %475 = vector.extract_strided_slice %474 {offsets = [0, 0], sizes = [8, 96], strides = [1, 1]} : vector<8x128xf32> to vector<8x96xf32>
    %476 = arith.negf %475 : vector<8x96xf32>
    %477 = math.exp %476 : vector<8x96xf32>
    %cst_74 = arith.constant 1.000000e+00 : f32
    %478 = vector.broadcast %cst_74 : f32 to vector<8x96xf32>
    %479 = arith.addf %478, %477 : vector<8x96xf32>
    %480 = arith.divf %478, %479 : vector<8x96xf32>
    %481 = vector.extract_strided_slice %474 {offsets = [0, 96], sizes = [8, 32], strides = [1, 1]} : vector<8x128xf32> to vector<8x32xf32>
    %482 = math.tanh %481 : vector<8x32xf32>
    %483 = vector.extract_strided_slice %480 {offsets = [0, 0], sizes = [8, 32], strides = [1, 1]} : vector<8x96xf32> to vector<8x32xf32>
    %484 = vector.extract_strided_slice %480 {offsets = [0, 32], sizes = [8, 32], strides = [1, 1]} : vector<8x96xf32> to vector<8x32xf32>
    %485 = vector.extract_strided_slice %480 {offsets = [0, 64], sizes = [8, 32], strides = [1, 1]} : vector<8x96xf32> to vector<8x32xf32>
    %486 = arith.mulf %484, %468 : vector<8x32xf32>
    %487 = arith.mulf %483, %482 : vector<8x32xf32>
    %488 = arith.addf %486, %487 : vector<8x32xf32>
    %489 = math.tanh %488 : vector<8x32xf32>
    %490 = arith.mulf %485, %489 : vector<8x32xf32>
    %491 = arith.truncf %490 : vector<8x32xf32> to vector<8x32xbf16>
    %cst_75 = arith.constant dense<0.000000e+00> : vector<8x128xf32>
    %492 = tpu.matmul %491, %345, %cst_75 {dimension_numbers = #tpu.dot_dimension_numbers<[1], [0], [0], [1], [0, 0, 1, 1], [], []>} : vector<8x32xbf16>, vector<32x128xbf16>, vector<8x128xf32> -> vector<8x128xf32>
    %493 = vector.extract_strided_slice %344 {offsets = [48, 0], sizes = [8, 128], strides = [1, 1]} : vector<64x256xf32> to vector<8x128xf32>
    %494 = arith.addf %493, %492 : vector<8x128xf32>
    %495 = vector.extract_strided_slice %494 {offsets = [0, 0], sizes = [8, 96], strides = [1, 1]} : vector<8x128xf32> to vector<8x96xf32>
    %496 = arith.negf %495 : vector<8x96xf32>
    %497 = math.exp %496 : vector<8x96xf32>
    %cst_76 = arith.constant 1.000000e+00 : f32
    %498 = vector.broadcast %cst_76 : f32 to vector<8x96xf32>
    %499 = arith.addf %498, %497 : vector<8x96xf32>
    %500 = arith.divf %498, %499 : vector<8x96xf32>
    %501 = vector.extract_strided_slice %494 {offsets = [0, 96], sizes = [8, 32], strides = [1, 1]} : vector<8x128xf32> to vector<8x32xf32>
    %502 = math.tanh %501 : vector<8x32xf32>
    %503 = vector.extract_strided_slice %500 {offsets = [0, 0], sizes = [8, 32], strides = [1, 1]} : vector<8x96xf32> to vector<8x32xf32>
    %504 = vector.extract_strided_slice %500 {offsets = [0, 32], sizes = [8, 32], strides = [1, 1]} : vector<8x96xf32> to vector<8x32xf32>
    %505 = vector.extract_strided_slice %500 {offsets = [0, 64], sizes = [8, 32], strides = [1, 1]} : vector<8x96xf32> to vector<8x32xf32>
    %506 = arith.mulf %504, %488 : vector<8x32xf32>
    %507 = arith.mulf %503, %502 : vector<8x32xf32>
    %508 = arith.addf %506, %507 : vector<8x32xf32>
    %509 = math.tanh %508 : vector<8x32xf32>
    %510 = arith.mulf %505, %509 : vector<8x32xf32>
    %511 = arith.truncf %510 : vector<8x32xf32> to vector<8x32xbf16>
    %cst_77 = arith.constant dense<0.000000e+00> : vector<8x128xf32>
    %512 = tpu.matmul %511, %345, %cst_77 {dimension_numbers = #tpu.dot_dimension_numbers<[1], [0], [0], [1], [0, 0, 1, 1], [], []>} : vector<8x32xbf16>, vector<32x128xbf16>, vector<8x128xf32> -> vector<8x128xf32>
    %513 = vector.extract_strided_slice %344 {offsets = [56, 0], sizes = [8, 128], strides = [1, 1]} : vector<64x256xf32> to vector<8x128xf32>
    %514 = arith.addf %513, %512 : vector<8x128xf32>
    %515 = vector.extract_strided_slice %514 {offsets = [0, 0], sizes = [8, 96], strides = [1, 1]} : vector<8x128xf32> to vector<8x96xf32>
    %516 = arith.negf %515 : vector<8x96xf32>
    %517 = math.exp %516 : vector<8x96xf32>
    %cst_78 = arith.constant 1.000000e+00 : f32
    %518 = vector.broadcast %cst_78 : f32 to vector<8x96xf32>
    %519 = arith.addf %518, %517 : vector<8x96xf32>
    %520 = arith.divf %518, %519 : vector<8x96xf32>
    %521 = vector.extract_strided_slice %514 {offsets = [0, 96], sizes = [8, 32], strides = [1, 1]} : vector<8x128xf32> to vector<8x32xf32>
    %522 = math.tanh %521 : vector<8x32xf32>
    %523 = vector.extract_strided_slice %520 {offsets = [0, 0], sizes = [8, 32], strides = [1, 1]} : vector<8x96xf32> to vector<8x32xf32>
    %524 = vector.extract_strided_slice %520 {offsets = [0, 32], sizes = [8, 32], strides = [1, 1]} : vector<8x96xf32> to vector<8x32xf32>
    %525 = vector.extract_strided_slice %520 {offsets = [0, 64], sizes = [8, 32], strides = [1, 1]} : vector<8x96xf32> to vector<8x32xf32>
    %526 = arith.mulf %524, %508 : vector<8x32xf32>
    %527 = arith.mulf %523, %522 : vector<8x32xf32>
    %528 = arith.addf %526, %527 : vector<8x32xf32>
    %529 = math.tanh %528 : vector<8x32xf32>
    %530 = arith.mulf %525, %529 : vector<8x32xf32>
    %c0_79 = arith.constant 0 : index
    %c0_80 = arith.constant 0 : index
    %531 = vector.load %arg10[%c0_79, %c0_80] : memref<1x32xf32, #tpu.memory_space<vmem>>, vector<1x32xf32>
    %532 = vector.broadcast %531 : vector<1x32xf32> to vector<8x32xf32>
    %533 = arith.mulf %530, %532 : vector<8x32xf32>
    %cst_81 = arith.constant dense<0.000000e+00> : vector<8xf32>
    %534 = vector.multi_reduction <add>, %533, %cst_81 [1] : vector<8x32xf32> to vector<8xf32>
    %535 = vector.shape_cast %534 : vector<8xf32> to vector<8x1xf32>
    %c0_82 = arith.constant 0 : index
    %c0_83 = arith.constant 0 : index
    %536 = vector.load %arg11[%c0_82, %c0_83] : memref<1x32xf32, #tpu.memory_space<vmem>>, vector<1x32xf32>
    %537 = vector.broadcast %536 : vector<1x32xf32> to vector<8x32xf32>
    %538 = arith.mulf %390, %537 : vector<8x32xf32>
    %cst_84 = arith.constant dense<0.000000e+00> : vector<8xf32>
    %539 = vector.multi_reduction <add>, %538, %cst_84 [1] : vector<8x32xf32> to vector<8xf32>
    %540 = vector.shape_cast %539 : vector<8xf32> to vector<8x1xf32>
    %541 = arith.addf %535, %540 : vector<8x1xf32>
    %c0_85 = arith.constant 0 : index
    %c0_86 = arith.constant 0 : index
    %542 = vector.load %arg12[%c0_85, %c0_86] : memref<1x1xf32, #tpu.memory_space<vmem>>, vector<1x1xf32>
    %543 = vector.broadcast %542 : vector<1x1xf32> to vector<8x1xf32>
    %544 = arith.addf %541, %543 : vector<8x1xf32>
    %c0_87 = arith.constant 0 : index
    %c0_88 = arith.constant 0 : index
    %545 = vector.load %arg13[%c0_87, %c0_88] : memref<8x1xf32, #tpu.memory_space<vmem>>, vector<8x1xf32>
    tpu.vector_store %arg13[%c0_87, %c0_88], %544 {strides = array<i32>} : memref<8x1xf32, #tpu.memory_space<vmem>>, vector<8x1xf32>,
    return
  }
}

</mosaic_0001>

<bundles_post_ra>
// kernel: bilstm_regressor_forward.1
= control target key start
LH: loop header
LB: loop body
LE: loop exit
PB: predicated region body
PF: predicated region fallthrough
CT: control target
= control target key end

     0   :  { %s3665_s0 = inlined_call_operand.vmem [shape: f32[64,8], index: 0, kind: input, shape index: {}]   ;;  %s3666_s1 = inlined_call_operand.vmem [shape: bf16[8,256], index: 1, kind: input, shape index: {}]   ;;  %s3667_s2 = inlined_call_operand.hbm [shape: f32[1,256], index: 2, kind: input, shape index: {}]   ;;  %s3668_s3 = inlined_call_operand.vmem [shape: bf16[32,128], index: 3, kind: input, shape index: {}]   ;;  %s3669_s4 = inlined_call_operand.vmem [shape: bf16[32,128], index: 4, kind: input, shape index: {}]   ;;  %s3670_s5 = inlined_call_operand.vmem [shape: bf16[32,256], index: 5, kind: input, shape index: {}]   ;;  %s3671_s6 = inlined_call_operand.vmem [shape: bf16[32,256], index: 6, kind: input, shape index: {}]   ;;  %s3672_s7 = inlined_call_operand.vmem [shape: f32[1,256], index: 7, kind: input, shape index: {}]   ;;  %s3673_s8 = inlined_call_operand.vmem [shape: bf16[32,128], index: 8, kind: input, shape index: {}]   ;;  %s3674_s9 = inlined_call_operand.vmem [shape: bf16[32,128], index: 9, kind: input, shape index: {}]   ;;  %s3675_s10 = inlined_call_operand.vmem [shape: f32[1,32], index: 10, kind: input, shape index: {}]   ;;  %s3676_s11 = inlined_call_operand.vmem [shape: f32[1,32], index: 11, kind: input, shape index: {}]   ;;  %s3677_s12 = inlined_call_operand.<no memory space> [shape: f32[1,1], index: 12, kind: input, shape index: {}]   ;;  %s3678_s13 = inlined_call_operand.vmem [shape: f32[8,1], index: 13, kind: output, shape index: {}]  }
   0x1   :  { %v18_v0 = vstv %s3677_s12 }
   0x2   :  { %19 = vst [vmem:[#allocation2] sm:$0x1] %v18_v0 }
   0x3   :  { %20 = vsyncpa [#allocation4], 0  ;;  %s2936_s27 = smov [#allocation3]  }
   0x4   :  { %s31_s28 = sshll.u32 %s2936_s27, 4  ;;  %s32_s28 = int_to_ptr.vmem [resolvable:$true] %s31_s28 }
   0x5   :  { %s2922_s29 = scalar_lea.vmem %s32_s28, 32  ;;  %p2927_p1 = scmp.lt.s32.totalorder %s32_s28, %s32_s28 }
   0x6   :  { %p2923_p0 = scmp.ne.s32.totalorder %s32_s28, %s2922_s29  ;;  %p2928_p2 = scmp.lt.s32.totalorder %s2922_s29, %s2922_s29 }
   0x8   :  { %p2929_p3 = por %p2928_p2, %p2927_p1 }
   0xa   :  { %p2930_p4 = pnand %p2929_p3, %p2923_p0 }
   0xc   :  { %2933 = shalt.err (!%p2930_p4)
}
   0xd   :  { %34 = dma.hbm_to_vmem [thread:$0]  %s3667_s2, 32, %s32_s28, [#allocation4]  }
   0xe   :  { %2934 = dma.done.wait [#allocation4], 32  }
   0xf   :  { %2935 = vsyncadd [#allocation4], 4294967264  ;;  %v2937_v1 = vmov 0.0   ;;  %v2938_v2 = vmov 0   ;;  %vm2939_vm0 = vmmov 0   ;;  %v71_v3 = vld [vmem:[%s3666_s1] sm:$0xff]  ;;  %v74_v23 = vlaneseq }
  0x10   :  { %2484 = vmatprep.subr.bf16.mxu1 %v2937_v1  ;;  %141 = vmatprep.mubr.bf16.mxu0 %v2938_v2  ;;  %vm102_vm1 = vcmask 1043456   ;;  %v2330_v4 = vcombine.high %v71_v3, %v71_v3  ;;  %v3028_v5 = vld [vmem:[%s3668_s3 + $0x8] sm:$0xff]   ;;  %v2329_v6 = vcombine.low %v71_v3, %v71_v3  ;;  %v59_v7 = vld [vmem:[%s3665_s0] sm:$0xff]  ;;  %vm89_vm2 = vcmask 64512   ;;  %v61_v12 = vld [vmem:[%s3665_s0 + $0x10] sm:$0xff]  ;;  %s2941_s18 = smov 64  }
  0x11   :  { %2488 = vmatprep.mubr.msk.bf16.mxu1 %vm2939_vm0, %v2937_v1  ;;  %v60_v8 = vld [vmem:[%s3665_s0 + $0x8] sm:$0xff]  ;;  %2485 = vmatpush3.bf16.msra.mxu1 %v3028_v5  ;;  %v3040_v11 = vld [vmem:[%s3668_s3] sm:$0xff]   ;;  %v62_v13 = vld [vmem:[%s3665_s0 + $0x18] sm:$0xff]  ;;  %v3101_v24 = vshrl.u32 %v74_v23, 7  ;;  %vm202_vm3 = vcmask 261120   ;;  %vm2322_vm4 = vcmask 7168  }
  0x12   :  { %2331 = vmatprep.subr.msk.bf16.mxu0 %vm102_vm1, %v2330_v4  ;;  %v104_v9 = vsel %vm102_vm1, %v2329_v6, 0  ;;  %v67_v10 = vpack.c.bf16 %v60_v8, %v59_v7  ;;  %2486 = vmatprep.subr.bf16.mxu1 %v2937_v1  ;;  %v3055_v14 = vld [vmem:[%s3669_s4 + $0x8] sm:$0xff]   ;;  %v3062_v15 = vld [vmem:[%s3669_s4] sm:$0xff]   ;;  %v68_v16 = vpack.c.bf16 %v62_v13, %v61_v12  ;;  %v65_v20 = vld [vmem:[%s3665_s0 + $0x30] sm:$0xff] }
  0x13   :  { %124 = vmatpush1.bf16.msra.mxu0 %v104_v9  ;;  %v63_v17 = vld [vmem:[%s3665_s0 + $0x20] sm:$0xff]  ;;  %v64_v18 = vld [vmem:[%s3665_s0 + $0x28] sm:$0xff]  ;;  %v66_v21 = vld [vmem:[%s3665_s0 + $0x38] sm:$0xff]  ;;  %v76_v25 = vsub.s32 0, %v3101_v24  ;;  %v80_v27 = vsub.s32 1, %v3101_v24  ;;  %s2940_s0 = smov 32  }
  0x14   :  { %2516 = vmatprep.subr.bf16.mxu0 %v2937_v1  ;;  %v69_v19 = vpack.c.bf16 %v64_v18, %v63_v17  ;;  %v70_v22 = vpack.c.bf16 %v66_v21, %v65_v20  ;;  %v72_v26 = vld [vmem:[#allocation3] sm:$0x3] }
  0x15   :  { %2487 = vmatpush3.bf16.msra.mxu1 %v3040_v11  ;;  %v77_v28 = vrot.slane %v72_v26, %v76_v25  ;;  %v81_v29 = vrot.slane %v72_v26, %v80_v27 }
  0x16   :  { %2332 = vmatmul.mubr.msk.bf16.vlgmr.msra.gmra.mxu0 %vm89_vm2, %v67_v10  ;;  %2492 = vmatprep.subr.bf16.mxu1 %v2937_v1 }
  0x17   :  { %151 = vmatprep.mubr.bf16.mxu0 %v2938_v2  ;;  %2517 = vmatpush3.bf16.msra.mxu0 %v3028_v5 }
  0x18   :  { %2489 = vmatmul.mubr.bf16.vlgmr.msra.gmra.mxu1 %v2938_v2  ;;  %2518 = vmatprep.subr.bf16.mxu0 %v2937_v1 }
  0x19   :  { %2493 = vmatpush3.bf16.msra.mxu1 %v3055_v14  ;;  %2496 = vmatprep.mubr.msk.bf16.mxu1 %vm2939_vm0, %v2937_v1 }
  0x1a   :  { %2494 = vmatprep.subr.bf16.mxu1 %v2937_v1 }
  0x1b   :  { %2519 = vmatpush3.bf16.msra.mxu0 %v3040_v11 }
  0x1c   :  { %2532 = vmatprep.subr.bf16.mxu0 %v2937_v1 }
  0x1d   :  { %2495 = vmatpush3.bf16.msra.mxu1 %v3062_v15 }
  0x1e   :  { %2333 = vmatmul.mubr.msk.bf16.gmra.mxu0 %vm89_vm2, %v68_v16  ;;  %2500 = vmatprep.subr.bf16.mxu1 %v2937_v1 }
  0x1f   :  { %161 = vmatprep.mubr.bf16.mxu0 %v2938_v2 }
  0x20   :  { %2497 = vmatmul.mubr.bf16.vlgmr.msra.gmra.mxu1 %v2938_v2 }
  0x21   :  { %2501 = vmatpush3.bf16.msra.mxu1 %v3028_v5  ;;  %2504 = vmatprep.mubr.msk.bf16.mxu1 %vm2939_vm0, %v2937_v1 }
  0x22   :  { %2502 = vmatprep.subr.bf16.mxu1 %v2937_v1 }
  0x25   :  { %2503 = vmatpush3.bf16.msra.mxu1 %v3040_v11 }
  0x26   :  { %2334 = vmatmul.mubr.msk.bf16.gmra.mxu0 %vm89_vm2, %v69_v19  ;;  %2508 = vmatprep.subr.bf16.mxu1 %v2937_v1 }
  0x27   :  { %171 = vmatprep.mubr.bf16.mxu0 %v2938_v2 }
  0x2e   :  { %2335 = vmatmul.mubr.msk.bf16.gmra.mxu0 %vm89_vm2, %v70_v22 }
  0x2f   :  { %2520 = vmatprep.mubr.msk.bf16.mxu0 %vm2939_vm0, %v2937_v1 }
  0xd6   :  { %v143_v30 = vpop.f32.mrf.mxu0 }
  0xd7   :  { %v144_v31 = vadd.f32 %v143_v30, %v77_v28 }
  0xd8   :  { %v145_v32 = vpop.f32.mrf.mxu0  ;;  %v240_v34 = vpop.f32.mrf.mxu1 }
  0xd9   :  { %v3109_v33 = vadd.f32 %v145_v32, %v81_v29  ;;  %v298_v35 = vadd.f32 %v240_v34, %v144_v31 }
  0xda   :  { %v147_v36 = vpop.f32.mrf.mxu0  ;;  %v2490_v38 = vpop.f32.mrf.mxu1 }
  0xdb   :  { %v3111_v37 = vadd.f32 %v147_v36, %v77_v28  ;;  %2712 = vtanh.f32 %v298_v35  ;;  %v2340_v16 = vmul.f32 -1.442695, %v298_v35 }
  0xdc   :  { %v149_v39 = vpop.f32.mrf.mxu0  ;;  %v243_v41 = vpop.f32.mrf.mxu1 }
  0xdd   :  { %v3113_v40 = vadd.f32 %v149_v39, %v81_v29 }
  0xde   :  { %v153_v42 = vpop.f32.mrf.mxu0  ;;  %v2491_v44 = vpop.f32.mrf.mxu1 }
  0xdf   :  { %v3115_v43 = vadd.f32 %v153_v42, %v77_v28 }
  0xe0   :  { %v155_v45 = vpop.f32.mrf.mxu0  ;;  %v292_v47 = vpop.f32.mrf.mxu1 }
  0xe1   :  { %v3117_v46 = vadd.f32 %v155_v45, %v81_v29 }
  0xe2   :  { %v157_v48 = vpop.f32.mrf.mxu0  ;;  %v2498_v50 = vpop.f32.mrf.mxu1 }
  0xe3   :  { %v3119_v49 = vadd.f32 %v157_v48, %v77_v28 }
  0xe4   :  { %v159_v51 = vpop.f32.mrf.mxu0  ;;  %v295_v53 = vpop.f32.mrf.mxu1 }
  0xe5   :  { %v3121_v52 = vadd.f32 %v159_v51, %v81_v29 }
  0xe6   :  { %v163_v54 = vpop.f32.mrf.mxu0  ;;  %v2499_v56 = vpop.f32.mrf.mxu1 }
  0xe7   :  { %v3123_v55 = vadd.f32 %v163_v54, %v77_v28 }
  0xe8   :  { %v165_v57 = vpop.f32.mrf.mxu0  ;;  %v2713_v58 = vpop.eup %2712 }
  0xe9   :  { %v3125_v59 = vadd.f32 %v165_v57, %v81_v29  ;;  %309 = vrot.lane.b32.xlu0 %v2713_v58, %s2940_s0 }
  0xea   :  { %v167_v60 = vpop.f32.mrf.mxu0 }
  0xeb   :  { %v3128_v61 = vadd.f32 %v167_v60, %v77_v28 }
  0xec   :  { %v169_v62 = vpop.f32.mrf.mxu0 }
  0xed   :  { %v3130_v63 = vadd.f32 %v169_v62, %v81_v29 }
  0xee   :  { %v173_v0 = vpop.f32.mrf.mxu0 }
  0xef   :  { %v3132_v3 = vadd.f32 %v173_v0, %v77_v28 }
  0xf0   :  { %v175_v4 = vpop.f32.mrf.mxu0 }
  0xf1   :  { %v3134_v6 = vadd.f32 %v175_v4, %v81_v29 }
  0xf2   :  { %v177_v7 = vpop.f32.mrf.mxu0 }
  0xf3   :  { %v3136_v8 = vadd.f32 %v177_v7, %v77_v28 }
  0xf4   :  { %v179_v9 = vpop.f32.mrf.mxu0 }
  0xf5   :  { %v180_v10 = vadd.f32 %v179_v9, %v81_v29 }
  0xf7   :  { %v299_v12 = vadd.f32 %v292_v47, %v180_v10 }
  0xf9   :  { %2714 = vtanh.f32 %v299_v12  ;;  %v2341_v19 = vmul.f32 -1.442695, %v299_v12 }
  0xfa   :  { %2716 = vpow2.f32 %v2340_v16 }
 0x106   :  { %v2715_v13 = vpop.eup %2714 }
 0x107   :  { %333 = vrot.lane.b32.xlu0 %v2715_v13, %s2940_s0  ;;  %v2717_v17 = vpop.eup %2716 }
 0x108   :  { %v303_v18 = vadd.f32 1.0, %v2717_v17 }
 0x10a   :  { %2718 = vrcp.f32 %v303_v18 }
 0x10b   :  { %2720 = vpow2.f32 %v2341_v19 }
 0x117   :  { %v2719_v20 = vpop.eup %2718 }
 0x118   :  { %v2721_v23 = vpop.eup %2720  ;;  %v307_v31 = vmul.f32 0.0, %v2719_v20 }
 0x119   :  { %v327_v26 = vadd.f32 1.0, %v2721_v23 }
 0x11b   :  { %2722 = vrcp.f32 %v327_v26 }
 0x128   :  { %v2723_v28 = vpop.eup %2722 }
 0x129   :  { %v331_v36 = vmul.f32 0.0, %v2723_v28 }
 0x15b   :  { %v310_v21 = vpop.permute.xlu0 %309 }
 0x15c   :  { %v312_v22 = vmul.f32 %v2719_v20, %v310_v21 }
 0x15e   :  { %314 = vrot.lane.b32.xlu1 %v312_v22, %s2940_s0 }
 0x179   :  { %v334_v29 = vpop.permute.xlu0 %333 }
 0x17a   :  { %v336_v30 = vmul.f32 %v2723_v28, %v334_v29 }
 0x17c   :  { %338 = vrot.lane.b32.xlu1 %v336_v30, %s2940_s0 }
 0x1d0   :  { %v315_v32 = vpop.permute.xlu1 %314 }
 0x1d1   :  { %v3141_v34 = vadd.f32 %v315_v32, %v307_v31 }
 0x1d3   :  { %2724 = vtanh.f32 %v3141_v34 }
 0x1e0   :  { %v2725_v35 = vpop.eup %2724 }
 0x1e1   :  { %320 = vrot.lane.b32.xlu0 %v2725_v35, %s2940_s0 }
 0x1ee   :  { %v339_v38 = vpop.permute.xlu1 %338 }
 0x1ef   :  { %v341_v39 = vadd.f32 %v339_v38, %v331_v36 }
 0x1f1   :  { %2726 = vtanh.f32 %v341_v39 }
 0x1fe   :  { %v2727_v41 = vpop.eup %2726 }
 0x1ff   :  { %344 = vrot.lane.b32.xlu1 %v2727_v41, %s2940_s0 }
 0x253   :  { %v321_v42 = vpop.permute.xlu0 %320 }
 0x254   :  { %v3146_v44 = vmul.f32 %v2719_v20, %v321_v42 }
 0x256   :  { %v348_v45 = vpack.c.bf16 %v3146_v44, %v3146_v44 }
 0x258   :  { %350 = vrot.lane.b32.xlu0 %v348_v45, %s2941_s18 }
 0x271   :  { %v345_v47 = vpop.permute.xlu1 %344 }
 0x272   :  { %v3151_v48 = vmul.f32 %v2723_v28, %v345_v47 }
 0x274   :  { %v395_v50 = vpack.c.bf16 %v3151_v48, %v3151_v48 }
 0x276   :  { %397 = vrot.lane.b32.xlu1 %v395_v50, %s2941_s18 }
 0x2ca   :  { %v351_v51 = vpop.permute.xlu0 %350 }
 0x2cb   :  { %2505 = vmatmul.mubr.msk.bf16.vlgmr.msra.gmra.mxu1 %vm202_vm3, %v351_v51 }
 0x2cc   :  { %2509 = vmatpush3.bf16.msra.mxu1 %v3055_v14  ;;  %2512 = vmatprep.mubr.msk.bf16.mxu1 %vm2939_vm0, %v2937_v1 }
 0x2cd   :  { %2510 = vmatprep.subr.bf16.mxu1 %v2937_v1 }
 0x2d0   :  { %2511 = vmatpush3.bf16.msra.mxu1 %v3062_v15 }
 0x2d1   :  { %2524 = vmatprep.subr.bf16.mxu1 %v2937_v1 }
 0x2e8   :  { %v398_v53 = vpop.permute.xlu1 %397 }
 0x2e9   :  { %2513 = vmatmul.mubr.msk.bf16.vlgmr.msra.gmra.mxu1 %vm202_vm3, %v398_v53 }
 0x2ea   :  { %2525 = vmatpush3.bf16.msra.mxu1 %v3055_v14  ;;  %2528 = vmatprep.mubr.msk.bf16.mxu1 %vm2939_vm0, %v2937_v1 }
 0x2eb   :  { %2526 = vmatprep.subr.bf16.mxu1 %v2937_v1 }
 0x2ee   :  { %2527 = vmatpush3.bf16.msra.mxu1 %v3062_v15 }
 0x2ef   :  { %2540 = vmatprep.subr.bf16.mxu1 %v2937_v1 }
 0x38b   :  { %v389_v54 = vpop.f32.mrf.mxu1 }
 0x38c   :  { %v442_v56 = vadd.f32 %v389_v54, %v3111_v37 }
 0x38d   :  { %v2506_v57 = vpop.f32.mrf.mxu1 }
 0x38e   :  { %v2344_v23 = vmul.f32 -1.442695, %v442_v56 }
 0x38f   :  { %v392_v58 = vpop.f32.mrf.mxu1 }
 0x391   :  { %v2507_v60 = vpop.f32.mrf.mxu1 }
 0x3a9   :  { %v436_v62 = vpop.f32.mrf.mxu1 }
 0x3aa   :  { %v443_v0 = vadd.f32 %v436_v62, %v3134_v6 }
 0x3ab   :  { %v2514_v4 = vpop.f32.mrf.mxu1 }
 0x3ac   :  { %2728 = vtanh.f32 %v443_v0  ;;  %v2345_v12 = vmul.f32 -1.442695, %v443_v0 }
 0x3ad   :  { %v439_v7 = vpop.f32.mrf.mxu1 }
 0x3ae   :  { %2730 = vpow2.f32 %v2345_v12 }
 0x3af   :  { %v2515_v9 = vpop.f32.mrf.mxu1 }
 0x3b9   :  { %v2729_v10 = vpop.eup %2728 }
 0x3ba   :  { %477 = vrot.lane.b32.xlu0 %v2729_v10, %s2940_s0 }
 0x3bb   :  { %v2731_v13 = vpop.eup %2730 }
 0x3bc   :  { %v471_v16 = vadd.f32 1.0, %v2731_v13 }
 0x3be   :  { %2732 = vrcp.f32 %v471_v16 }
 0x3cb   :  { %v2733_v17 = vpop.eup %2732 }
 0x3cc   :  { %v475_v19 = vmul.f32 %v2733_v17, %v341_v39 }
 0x42c   :  { %v478_v37 = vpop.permute.xlu0 %477 }
 0x42d   :  { %v480_v18 = vmul.f32 %v2733_v17, %v478_v37 }
 0x42f   :  { %482 = vrot.lane.b32.xlu1 %v480_v18, %s2940_s0 }
 0x4a1   :  { %v483_v20 = vpop.permute.xlu1 %482 }
 0x4a2   :  { %v485_v6 = vadd.f32 %v483_v20, %v475_v19 }
 0x4a4   :  { %2734 = vtanh.f32 %v485_v6 }
 0x4a5   :  { %2736 = vtanh.f32 %v442_v56 }
 0x4a6   :  { %2738 = vpow2.f32 %v2344_v23 }
 0x4b1   :  { %v2735_v21 = vpop.eup %2734 }
 0x4b2   :  { %488 = vrot.lane.b32.xlu0 %v2735_v21, %s2940_s0  ;;  %v2737_v22 = vpop.eup %2736 }
 0x4b3   :  { %v2739_v26 = vpop.eup %2738 }
 0x4b4   :  { %v447_v28 = vadd.f32 1.0, %v2739_v26 }
 0x4b6   :  { %453 = vrot.lane.b32.xlu0 %v2737_v22, %s2940_s0  ;;  %2740 = vrcp.f32 %v447_v28 }
 0x4c3   :  { %v2741_v32 = vpop.eup %2740 }
 0x4c4   :  { %v451_v39 = vmul.f32 %v2741_v32, %v3141_v34 }
 0x524   :  { %v489_v29 = vpop.permute.xlu0 %488 }
 0x525   :  { %v3176_v30 = vmul.f32 %v2733_v17, %v489_v29 }
 0x527   :  { %v539_v31 = vpack.c.bf16 %v3176_v30, %v3176_v30 }
 0x528   :  { %v454_v35 = vpop.permute.xlu0 %453 }
 0x529   :  { %v456_v36 = vmul.f32 %v2741_v32, %v454_v35  ;;  %541 = vrot.lane.b32.xlu1 %v539_v31, %s2941_s18 }
 0x52b   :  { %458 = vrot.lane.b32.xlu0 %v456_v36, %s2940_s0 }
 0x59b   :  { %v542_v38 = vpop.permute.xlu1 %541 }
 0x59c   :  { %2529 = vmatmul.mubr.msk.bf16.vlgmr.msra.gmra.mxu1 %vm202_vm3, %v542_v38 }
 0x59d   :  { %v459_v41 = vpop.permute.xlu0 %458  ;;  %2541 = vmatpush3.bf16.msra.mxu1 %v3055_v14  ;;  %2544 = vmatprep.mubr.msk.bf16.mxu1 %vm2939_vm0, %v2937_v1 }
 0x59e   :  { %v3187_v42 = vadd.f32 %v459_v41, %v451_v39  ;;  %2542 = vmatprep.subr.bf16.mxu1 %v2937_v1 }
 0x5a0   :  { %2742 = vtanh.f32 %v3187_v42 }
 0x5a1   :  { %2543 = vmatpush3.bf16.msra.mxu1 %v3062_v15 }
 0x5a2   :  { %2556 = vmatprep.subr.bf16.mxu1 %v2937_v1 }
 0x5ad   :  { %v2743_v45 = vpop.eup %2742 }
 0x5ae   :  { %464 = vrot.lane.b32.xlu0 %v2743_v45, %s2940_s0 }
 0x620   :  { %v465_v34 = vpop.permute.xlu0 %464 }
 0x621   :  { %v3194_v47 = vmul.f32 %v2741_v32, %v465_v34 }
 0x623   :  { %v492_v50 = vpack.c.bf16 %v3194_v47, %v3194_v47 }
 0x625   :  { %494 = vrot.lane.b32.xlu0 %v492_v50, %s2941_s18 }
 0x65c   :  { %v580_v51 = vpop.f32.mrf.mxu1 }
 0x65d   :  { %v587_v53 = vadd.f32 %v580_v51, %v3130_v63 }
 0x65e   :  { %v2530_v54 = vpop.f32.mrf.mxu1 }
 0x65f   :  { %2744 = vtanh.f32 %v587_v53  ;;  %v2349_v63 = vmul.f32 -1.442695, %v587_v53 }
 0x660   :  { %v583_v56 = vpop.f32.mrf.mxu1 }
 0x661   :  { %2746 = vpow2.f32 %v2349_v63 }
 0x662   :  { %v2531_v57 = vpop.f32.mrf.mxu1 }
 0x66c   :  { %v2745_v58 = vpop.eup %2744 }
 0x66d   :  { %621 = vrot.lane.b32.xlu1 %v2745_v58, %s2940_s0 }
 0x66e   :  { %v2747_v62 = vpop.eup %2746 }
 0x66f   :  { %v615_v0 = vadd.f32 1.0, %v2747_v62 }
 0x671   :  { %2748 = vrcp.f32 %v615_v0 }
 0x67e   :  { %v2749_v4 = vpop.eup %2748 }
 0x67f   :  { %v619_v10 = vmul.f32 %v2749_v4, %v485_v6 }
 0x697   :  { %v495_v60 = vpop.permute.xlu0 %494 }
 0x698   :  { %2521 = vmatmul.mubr.msk.bf16.vlgmr.msra.gmra.mxu0 %vm202_vm3, %v495_v60 }
 0x699   :  { %2533 = vmatpush3.bf16.msra.mxu0 %v3028_v5  ;;  %2536 = vmatprep.mubr.msk.bf16.mxu0 %vm2939_vm0, %v2937_v1 }
 0x69a   :  { %2534 = vmatprep.subr.bf16.mxu0 %v2937_v1 }
 0x69d   :  { %2535 = vmatpush3.bf16.msra.mxu0 %v3040_v11 }
 0x69e   :  { %2548 = vmatprep.subr.bf16.mxu0 %v2937_v1 }
 0x6df   :  { %v622_v7 = vpop.permute.xlu1 %621 }
 0x6e0   :  { %v624_v9 = vmul.f32 %v2749_v4, %v622_v7 }
 0x6e2   :  { %626 = vrot.lane.b32.xlu1 %v624_v9, %s2940_s0 }
 0x754   :  { %v627_v12 = vpop.permute.xlu1 %626 }
 0x755   :  { %v3209_v13 = vadd.f32 %v627_v12, %v619_v10 }
 0x757   :  { %2750 = vtanh.f32 %v3209_v13 }
 0x758   :  { %v533_v16 = vpop.f32.mrf.mxu0 }
 0x759   :  { %v586_v17 = vadd.f32 %v533_v16, %v3115_v43 }
 0x75a   :  { %v2522_v37 = vpop.f32.mrf.mxu0 }
 0x75b   :  { %2752 = vtanh.f32 %v586_v17  ;;  %v2348_v22 = vmul.f32 -1.442695, %v586_v17 }
 0x75c   :  { %v536_v18 = vpop.f32.mrf.mxu0 }
 0x75d   :  { %2754 = vpow2.f32 %v2348_v22 }
 0x75e   :  { %v2523_v19 = vpop.f32.mrf.mxu0 }
 0x764   :  { %v2751_v20 = vpop.eup %2750 }
 0x765   :  { %632 = vrot.lane.b32.xlu1 %v2751_v20, %s2940_s0 }
 0x768   :  { %v2753_v21 = vpop.eup %2752 }
 0x769   :  { %597 = vrot.lane.b32.xlu0 %v2753_v21, %s2940_s0 }
 0x76a   :  { %v2755_v6 = vpop.eup %2754 }
 0x76b   :  { %v591_v23 = vadd.f32 1.0, %v2755_v6 }
 0x76d   :  { %2756 = vrcp.f32 %v591_v23 }
 0x77a   :  { %v2757_v29 = vpop.eup %2756 }
 0x77b   :  { %v595_v36 = vmul.f32 %v2757_v29, %v3187_v42 }
 0x7d7   :  { %v633_v26 = vpop.permute.xlu1 %632 }
 0x7d8   :  { %v3215_v28 = vmul.f32 %v2749_v4, %v633_v26 }
 0x7da   :  { %v683_v43 = vpack.c.bf16 %v3215_v28, %v3215_v28 }
 0x7db   :  { %v598_v31 = vpop.permute.xlu0 %597 }
 0x7dc   :  { %v600_v32 = vmul.f32 %v2757_v29, %v598_v31  ;;  %685 = vrot.lane.b32.xlu1 %v683_v43, %s2941_s18 }
 0x7de   :  { %602 = vrot.lane.b32.xlu0 %v600_v32, %s2940_s0 }
 0x84e   :  { %v686_v35 = vpop.permute.xlu1 %685 }
 0x84f   :  { %2545 = vmatmul.mubr.msk.bf16.vlgmr.msra.gmra.mxu1 %vm202_vm3, %v686_v35 }
 0x850   :  { %v603_v38 = vpop.permute.xlu0 %602  ;;  %2557 = vmatpush3.bf16.msra.mxu1 %v3055_v14  ;;  %2560 = vmatprep.mubr.msk.bf16.mxu1 %vm2939_vm0, %v2937_v1 }
 0x851   :  { %v3226_v39 = vadd.f32 %v603_v38, %v595_v36  ;;  %2558 = vmatprep.subr.bf16.mxu1 %v2937_v1 }
 0x853   :  { %2758 = vtanh.f32 %v3226_v39 }
 0x854   :  { %2559 = vmatpush3.bf16.msra.mxu1 %v3062_v15 }
 0x855   :  { %2572 = vmatprep.subr.bf16.mxu1 %v2937_v1 }
 0x860   :  { %v2759_v41 = vpop.eup %2758 }
 0x861   :  { %608 = vrot.lane.b32.xlu0 %v2759_v41, %s2940_s0 }
 0x8d3   :  { %v609_v42 = vpop.permute.xlu0 %608 }
 0x8d4   :  { %v3233_v45 = vmul.f32 %v2757_v29, %v609_v42 }
 0x8d6   :  { %v636_v34 = vpack.c.bf16 %v3233_v45, %v3233_v45 }
 0x8d8   :  { %638 = vrot.lane.b32.xlu0 %v636_v34, %s2941_s18 }
 0x90f   :  { %v724_v50 = vpop.f32.mrf.mxu1 }
 0x910   :  { %v731_v51 = vadd.f32 %v724_v50, %v3125_v59 }
 0x911   :  { %v2546_v53 = vpop.f32.mrf.mxu1 }
 0x912   :  { %2760 = vtanh.f32 %v731_v51  ;;  %v2353_v59 = vmul.f32 -1.442695, %v731_v51 }
 0x913   :  { %v727_v54 = vpop.f32.mrf.mxu1 }
 0x914   :  { %2762 = vpow2.f32 %v2353_v59 }
 0x915   :  { %v2547_v56 = vpop.f32.mrf.mxu1 }
 0x91f   :  { %v2761_v57 = vpop.eup %2760 }
 0x920   :  { %765 = vrot.lane.b32.xlu1 %v2761_v57, %s2940_s0 }
 0x921   :  { %v2763_v60 = vpop.eup %2762 }
 0x922   :  { %v759_v63 = vadd.f32 1.0, %v2763_v60 }
 0x924   :  { %2764 = vrcp.f32 %v759_v63 }
 0x931   :  { %v2765_v62 = vpop.eup %2764 }
 0x932   :  { %v763_v7 = vmul.f32 %v2765_v62, %v3209_v13 }
 0x94a   :  { %v639_v58 = vpop.permute.xlu0 %638 }
 0x94b   :  { %2537 = vmatmul.mubr.msk.bf16.vlgmr.msra.gmra.mxu0 %vm202_vm3, %v639_v58 }
 0x94c   :  { %2549 = vmatpush3.bf16.msra.mxu0 %v3028_v5  ;;  %2552 = vmatprep.mubr.msk.bf16.mxu0 %vm2939_vm0, %v2937_v1 }
 0x94d   :  { %2550 = vmatprep.subr.bf16.mxu0 %v2937_v1 }
 0x950   :  { %2551 = vmatpush3.bf16.msra.mxu0 %v3040_v11 }
 0x951   :  { %2564 = vmatprep.subr.bf16.mxu0 %v2937_v1 }
 0x992   :  { %v766_v0 = vpop.permute.xlu1 %765 }
 0x993   :  { %v768_v4 = vmul.f32 %v2765_v62, %v766_v0 }
 0x995   :  { %770 = vrot.lane.b32.xlu1 %v768_v4, %s2940_s0 }
 0xa07   :  { %v771_v9 = vpop.permute.xlu1 %770 }
 0xa08   :  { %v3249_v10 = vadd.f32 %v771_v9, %v763_v7 }
 0xa0a   :  { %2766 = vtanh.f32 %v3249_v10 }
 0xa0b   :  { %v677_v12 = vpop.f32.mrf.mxu0 }
 0xa0c   :  { %v730_v16 = vadd.f32 %v677_v12, %v3119_v49 }
 0xa0d   :  { %v2538_v17 = vpop.f32.mrf.mxu0 }
 0xa0e   :  { %2768 = vtanh.f32 %v730_v16  ;;  %v2352_v21 = vmul.f32 -1.442695, %v730_v16 }
 0xa0f   :  { %v680_v37 = vpop.f32.mrf.mxu0 }
 0xa10   :  { %2770 = vpow2.f32 %v2352_v21 }
 0xa11   :  { %v2539_v18 = vpop.f32.mrf.mxu0 }
 0xa17   :  { %v2767_v19 = vpop.eup %2766 }
 0xa18   :  { %776 = vrot.lane.b32.xlu1 %v2767_v19, %s2940_s0 }
 0xa1b   :  { %v2769_v20 = vpop.eup %2768 }
 0xa1c   :  { %741 = vrot.lane.b32.xlu0 %v2769_v20, %s2940_s0 }
 0xa1d   :  { %v2771_v13 = vpop.eup %2770 }
 0xa1e   :  { %v735_v22 = vadd.f32 1.0, %v2771_v13 }
 0xa20   :  { %2772 = vrcp.f32 %v735_v22 }
 0xa2d   :  { %v2773_v26 = vpop.eup %2772 }
 0xa2e   :  { %v739_v32 = vmul.f32 %v2773_v26, %v3226_v39 }
 0xa8a   :  { %v777_v6 = vpop.permute.xlu1 %776 }
 0xa8b   :  { %v3255_v23 = vmul.f32 %v2765_v62, %v777_v6 }
 0xa8d   :  { %v827_v49 = vpack.c.bf16 %v3255_v23, %v3255_v23 }
 0xa8e   :  { %v742_v43 = vpop.permute.xlu0 %741 }
 0xa8f   :  { %v744_v29 = vmul.f32 %v2773_v26, %v742_v43  ;;  %829 = vrot.lane.b32.xlu1 %v827_v49, %s2941_s18 }
 0xa91   :  { %746 = vrot.lane.b32.xlu0 %v744_v29, %s2940_s0 }
 0xb01   :  { %v830_v31 = vpop.permute.xlu1 %829 }
 0xb02   :  { %2561 = vmatmul.mubr.msk.bf16.vlgmr.msra.gmra.mxu1 %vm202_vm3, %v830_v31 }
 0xb03   :  { %v747_v35 = vpop.permute.xlu0 %746  ;;  %2573 = vmatpush3.bf16.msra.mxu1 %v3055_v14  ;;  %2576 = vmatprep.mubr.msk.bf16.mxu1 %vm2939_vm0, %v2937_v1 }
 0xb04   :  { %v3266_v36 = vadd.f32 %v747_v35, %v739_v32  ;;  %2574 = vmatprep.subr.bf16.mxu1 %v2937_v1 }
 0xb06   :  { %2774 = vtanh.f32 %v3266_v36 }
 0xb07   :  { %2575 = vmatpush3.bf16.msra.mxu1 %v3062_v15 }
 0xb08   :  { %2588 = vmatprep.subr.bf16.mxu1 %v2937_v1 }
 0xb13   :  { %v2775_v38 = vpop.eup %2774 }
 0xb14   :  { %752 = vrot.lane.b32.xlu0 %v2775_v38, %s2940_s0 }
 0xb86   :  { %v753_v39 = vpop.permute.xlu0 %752 }
 0xb87   :  { %v3273_v41 = vmul.f32 %v2773_v26, %v753_v39 }
 0xb89   :  { %v780_v42 = vpack.c.bf16 %v3273_v41, %v3273_v41 }
 0xb8b   :  { %782 = vrot.lane.b32.xlu0 %v780_v42, %s2941_s18 }
 0xbc2   :  { %v868_v34 = vpop.f32.mrf.mxu1 }
 0xbc3   :  { %v875_v50 = vadd.f32 %v868_v34, %v3121_v52 }
 0xbc4   :  { %v2562_v51 = vpop.f32.mrf.mxu1 }
 0xbc5   :  { %2776 = vtanh.f32 %v875_v50  ;;  %v2357_v52 = vmul.f32 -1.442695, %v875_v50 }
 0xbc6   :  { %v871_v53 = vpop.f32.mrf.mxu1 }
 0xbc7   :  { %2778 = vpow2.f32 %v2357_v52 }
 0xbc8   :  { %v2563_v54 = vpop.f32.mrf.mxu1 }
 0xbd2   :  { %v2777_v56 = vpop.eup %2776 }
 0xbd3   :  { %909 = vrot.lane.b32.xlu1 %v2777_v56, %s2940_s0 }
 0xbd4   :  { %v2779_v58 = vpop.eup %2778 }
 0xbd5   :  { %v903_v59 = vadd.f32 1.0, %v2779_v58 }
 0xbd7   :  { %2780 = vrcp.f32 %v903_v59 }
 0xbe4   :  { %v2781_v60 = vpop.eup %2780 }
 0xbe5   :  { %v907_v0 = vmul.f32 %v2781_v60, %v3249_v10 }
 0xbfd   :  { %v783_v57 = vpop.permute.xlu0 %782 }
 0xbfe   :  { %2553 = vmatmul.mubr.msk.bf16.vlgmr.msra.gmra.mxu0 %vm202_vm3, %v783_v57 }
 0xbff   :  { %2565 = vmatpush3.bf16.msra.mxu0 %v3028_v5  ;;  %2568 = vmatprep.mubr.msk.bf16.mxu0 %vm2939_vm0, %v2937_v1 }
 0xc00   :  { %2566 = vmatprep.subr.bf16.mxu0 %v2937_v1 }
 0xc03   :  { %2567 = vmatpush3.bf16.msra.mxu0 %v3040_v11 }
 0xc04   :  { %2580 = vmatprep.subr.bf16.mxu0 %v2937_v1 }
 0xc45   :  { %v910_v63 = vpop.permute.xlu1 %909 }
 0xc46   :  { %v912_v62 = vmul.f32 %v2781_v60, %v910_v63 }
 0xc48   :  { %914 = vrot.lane.b32.xlu1 %v912_v62, %s2940_s0 }
 0xcba   :  { %v915_v4 = vpop.permute.xlu1 %914 }
 0xcbb   :  { %v3289_v7 = vadd.f32 %v915_v4, %v907_v0 }
 0xcbd   :  { %2782 = vtanh.f32 %v3289_v7 }
 0xcbe   :  { %v821_v9 = vpop.f32.mrf.mxu0 }
 0xcbf   :  { %v874_v12 = vadd.f32 %v821_v9, %v3123_v55 }
 0xcc0   :  { %v2554_v16 = vpop.f32.mrf.mxu0 }
 0xcc1   :  { %2784 = vtanh.f32 %v874_v12  ;;  %v2356_v20 = vmul.f32 -1.442695, %v874_v12 }
 0xcc2   :  { %v824_v17 = vpop.f32.mrf.mxu0 }
 0xcc3   :  { %2786 = vpow2.f32 %v2356_v20 }
 0xcc4   :  { %v2555_v37 = vpop.f32.mrf.mxu0 }
 0xcca   :  { %v2783_v18 = vpop.eup %2782 }
 0xccb   :  { %920 = vrot.lane.b32.xlu1 %v2783_v18, %s2940_s0 }
 0xcce   :  { %v2785_v19 = vpop.eup %2784 }
 0xccf   :  { %885 = vrot.lane.b32.xlu0 %v2785_v19, %s2940_s0 }
 0xcd0   :  { %v2787_v10 = vpop.eup %2786 }
 0xcd1   :  { %v879_v21 = vadd.f32 1.0, %v2787_v10 }
 0xcd3   :  { %2788 = vrcp.f32 %v879_v21 }
 0xce0   :  { %v2789_v6 = vpop.eup %2788 }
 0xce1   :  { %v883_v29 = vmul.f32 %v2789_v6, %v3266_v36 }
 0xd3d   :  { %v921_v13 = vpop.permute.xlu1 %920 }
 0xd3e   :  { %v3295_v22 = vmul.f32 %v2781_v60, %v921_v13 }
 0xd40   :  { %v971_v55 = vpack.c.bf16 %v3295_v22, %v3295_v22 }
 0xd41   :  { %v886_v49 = vpop.permute.xlu0 %885 }
 0xd42   :  { %v888_v26 = vmul.f32 %v2789_v6, %v886_v49  ;;  %973 = vrot.lane.b32.xlu1 %v971_v55, %s2941_s18 }
 0xd44   :  { %890 = vrot.lane.b32.xlu0 %v888_v26, %s2940_s0 }
 0xdb4   :  { %v974_v43 = vpop.permute.xlu1 %973 }
 0xdb5   :  { %2577 = vmatmul.mubr.msk.bf16.vlgmr.msra.gmra.mxu1 %vm202_vm3, %v974_v43 }
 0xdb6   :  { %v891_v31 = vpop.permute.xlu0 %890  ;;  %2589 = vmatpush3.bf16.msra.mxu1 %v3055_v14  ;;  %2592 = vmatprep.mubr.msk.bf16.mxu1 %vm2939_vm0, %v2937_v1 }
 0xdb7   :  { %v3306_v32 = vadd.f32 %v891_v31, %v883_v29  ;;  %2590 = vmatprep.subr.bf16.mxu1 %v2937_v1 }
 0xdb9   :  { %2790 = vtanh.f32 %v3306_v32 }
 0xdba   :  { %2591 = vmatpush3.bf16.msra.mxu1 %v3062_v15 }
 0xdbb   :  { %2604 = vmatprep.subr.bf16.mxu1 %v2937_v1 }
 0xdc6   :  { %v2791_v35 = vpop.eup %2790 }
 0xdc7   :  { %896 = vrot.lane.b32.xlu0 %v2791_v35, %s2940_s0 }
 0xe39   :  { %v897_v36 = vpop.permute.xlu0 %896 }
 0xe3a   :  { %v3313_v38 = vmul.f32 %v2789_v6, %v897_v36 }
 0xe3c   :  { %v924_v39 = vpack.c.bf16 %v3313_v38, %v3313_v38 }
 0xe3e   :  { %926 = vrot.lane.b32.xlu0 %v924_v39, %s2941_s18 }
 0xe75   :  { %v1012_v42 = vpop.f32.mrf.mxu1 }
 0xe76   :  { %v1019_v34 = vadd.f32 %v1012_v42, %v3117_v46 }
 0xe77   :  { %v2578_v50 = vpop.f32.mrf.mxu1 }
 0xe78   :  { %2792 = vtanh.f32 %v1019_v34  ;;  %v2361_v46 = vmul.f32 -1.442695, %v1019_v34  ;;  %v2912_v50 = vld [vmem:[%s3668_s3 + $0x8] sm:$0xff]  }
 0xe79   :  { %v1015_v51 = vpop.f32.mrf.mxu1 }
 0xe7a   :  { %2794 = vpow2.f32 %v2361_v46 }
 0xe7b   :  { %v2579_v53 = vpop.f32.mrf.mxu1 }
 0xe85   :  { %v2793_v54 = vpop.eup %2792 }
 0xe86   :  { %1053 = vrot.lane.b32.xlu1 %v2793_v54, %s2940_s0 }
 0xe87   :  { %v2795_v57 = vpop.eup %2794 }
 0xe88   :  { %v1047_v52 = vadd.f32 1.0, %v2795_v57 }
 0xe8a   :  { %2796 = vrcp.f32 %v1047_v52 }
 0xe97   :  { %v2797_v58 = vpop.eup %2796 }
 0xeb0   :  { %v927_v56 = vpop.permute.xlu0 %926 }
 0xeb1   :  { %2569 = vmatmul.mubr.msk.bf16.vlgmr.msra.gmra.mxu0 %vm202_vm3, %v927_v56 }
 0xeb2   :  { %2581 = vmatpush3.bf16.msra.mxu0 %v3028_v5  ;;  %2584 = vmatprep.mubr.msk.bf16.mxu0 %vm2939_vm0, %v2937_v1  ;;  %v1051_v5 = vmul.f32 %v2797_v58, %v3289_v7 }
 0xeb3   :  { %2582 = vmatprep.subr.bf16.mxu0 %v2937_v1 }
 0xeb6   :  { %2583 = vmatpush3.bf16.msra.mxu0 %v3040_v11 }
 0xeb7   :  { %2596 = vmatprep.subr.bf16.mxu0 %v2937_v1 }
 0xef8   :  { %v1054_v59 = vpop.permute.xlu1 %1053 }
 0xef9   :  { %v1056_v60 = vmul.f32 %v2797_v58, %v1054_v59 }
 0xefb   :  { %1058 = vrot.lane.b32.xlu1 %v1056_v60, %s2940_s0 }
 0xf6d   :  { %v1059_v63 = vpop.permute.xlu1 %1058 }
 0xf6e   :  { %v3329_v62 = vadd.f32 %v1059_v63, %v1051_v5 }
 0xf70   :  { %2798 = vtanh.f32 %v3329_v62 }
 0xf71   :  { %v965_v11 = vpop.f32.mrf.mxu0 }
 0xf72   :  { %v1018_v0 = vadd.f32 %v965_v11, %v3128_v61 }
 0xf73   :  { %v2570_v4 = vpop.f32.mrf.mxu0 }
 0xf74   :  { %2800 = vtanh.f32 %v1018_v0  ;;  %v2360_v37 = vmul.f32 -1.442695, %v1018_v0 }
 0xf75   :  { %v968_v9 = vpop.f32.mrf.mxu0 }
 0xf76   :  { %2802 = vpow2.f32 %v2360_v37 }
 0xf77   :  { %v2571_v12 = vpop.f32.mrf.mxu0 }
 0xf7d   :  { %v2799_v16 = vpop.eup %2798 }
 0xf7e   :  { %1064 = vrot.lane.b32.xlu1 %v2799_v16, %s2940_s0 }
 0xf81   :  { %v2801_v17 = vpop.eup %2800 }
 0xf82   :  { %1029 = vrot.lane.b32.xlu0 %v2801_v17, %s2940_s0 }
 0xf83   :  { %v2803_v7 = vpop.eup %2802 }
 0xf84   :  { %v1023_v18 = vadd.f32 1.0, %v2803_v7 }
 0xf86   :  { %2804 = vrcp.f32 %v1023_v18 }
 0xf93   :  { %v2805_v10 = vpop.eup %2804 }
 0xf94   :  { %v1027_v6 = vmul.f32 %v2805_v10, %v3306_v32 }
 0xff0   :  { %v1065_v19 = vpop.permute.xlu1 %1064 }
 0xff1   :  { %v3335_v20 = vmul.f32 %v2797_v58, %v1065_v19 }
 0xff3   :  { %v1115_v61 = vpack.c.bf16 %v3335_v20, %v3335_v20 }
 0xff4   :  { %v1030_v21 = vpop.permute.xlu0 %1029 }
 0xff5   :  { %v1032_v13 = vmul.f32 %v2805_v10, %v1030_v21  ;;  %1117 = vrot.lane.b32.xlu1 %v1115_v61, %s2941_s18 }
 0xff7   :  { %1034 = vrot.lane.b32.xlu0 %v1032_v13, %s2940_s0 }
0x1067   :  { %v1118_v55 = vpop.permute.xlu1 %1117 }
0x1068   :  { %2593 = vmatmul.mubr.msk.bf16.vlgmr.msra.gmra.mxu1 %vm202_vm3, %v1118_v55 }
0x1069   :  { %v1035_v49 = vpop.permute.xlu0 %1034  ;;  %2605 = vmatpush3.bf16.msra.mxu1 %v3055_v14  ;;  %2608 = vmatprep.mubr.msk.bf16.mxu1 %vm2939_vm0, %v2937_v1 }
0x106a   :  { %v3346_v26 = vadd.f32 %v1035_v49, %v1027_v6  ;;  %2606 = vmatprep.subr.bf16.mxu1 %v2937_v1 }
0x106c   :  { %2806 = vtanh.f32 %v3346_v26 }
0x106d   :  { %2607 = vmatpush3.bf16.msra.mxu1 %v3062_v15 }
0x1079   :  { %v2807_v43 = vpop.eup %2806 }
0x107a   :  { %1040 = vrot.lane.b32.xlu0 %v2807_v43, %s2940_s0 }
0x10ec   :  { %v1041_v29 = vpop.permute.xlu0 %1040 }
0x10ed   :  { %v3352_v31 = vmul.f32 %v2805_v10, %v1041_v29  ;;  %v1367_v29 = vpack.c.bf16 %v3151_v48, %v3176_v30 }
0x10ef   :  { %v1068_v14 = vpack.c.bf16 %v3352_v31, %v3352_v31 }
0x10f1   :  { %1070 = vrot.lane.b32.xlu0 %v1068_v14, %s2941_s18 }
0x1128   :  { %v1156_v32 = vpop.f32.mrf.mxu1 }
0x1129   :  { %v1163_v35 = vadd.f32 %v1156_v32, %v3113_v40  ;;  %v2913_v40 = vld [vmem:[%s3668_s3] sm:$0xff]  }
0x112a   :  { %v2594_v36 = vpop.f32.mrf.mxu1 }
0x112b   :  { %2808 = vtanh.f32 %v1163_v35  ;;  %v2365_v51 = vmul.f32 -1.442695, %v1163_v35 }
0x112c   :  { %v1159_v39 = vpop.f32.mrf.mxu1 }
0x112d   :  { %2810 = vpow2.f32 %v2365_v51 }
0x112e   :  { %v2595_v42 = vpop.f32.mrf.mxu1 }
0x1138   :  { %v2809_v34 = vpop.eup %2808 }
0x1139   :  { %1197 = vrot.lane.b32.xlu1 %v2809_v34, %s2940_s0 }
0x113a   :  { %v2811_v53 = vpop.eup %2810 }
0x113b   :  { %v1191_v54 = vadd.f32 1.0, %v2811_v53 }
0x113d   :  { %2812 = vrcp.f32 %v1191_v54 }
0x114a   :  { %v2813_v56 = vpop.eup %2812 }
0x114b   :  { %v1195_v52 = vmul.f32 %v2813_v56, %v3329_v62 }
0x1163   :  { %v1071_v15 = vpop.permute.xlu0 %1070 }
0x1164   :  { %2585 = vmatmul.mubr.msk.bf16.vlgmr.msra.gmra.mxu0 %vm202_vm3, %v1071_v15 }
0x1165   :  { %2597 = vmatpush3.bf16.msra.mxu0 %v2912_v50  ;;  %2600 = vmatprep.mubr.msk.bf16.mxu0 %vm2939_vm0, %v2937_v1 }
0x1166   :  { %2598 = vmatprep.subr.bf16.mxu0 %v2937_v1 }
0x1169   :  { %2599 = vmatpush3.bf16.msra.mxu0 %v2913_v40 }
0x11ab   :  { %v1198_v46 = vpop.permute.xlu1 %1197 }
0x11ac   :  { %v1200_v57 = vmul.f32 %v2813_v56, %v1198_v46 }
0x11ae   :  { %1202 = vrot.lane.b32.xlu1 %v1200_v57, %s2940_s0 }
0x1220   :  { %v1203_v58 = vpop.permute.xlu1 %1202 }
0x1221   :  { %v1205_v59 = vadd.f32 %v1203_v58, %v1195_v52  ;;  %v2696_v58 = vld [vmem:[%s3671_s6 + $0x10] ss:$8 sps:$4 sm:$0xff]  }
0x1223   :  { %2814 = vtanh.f32 %v1205_v59 }
0x1224   :  { %v1109_v60 = vpop.f32.mrf.mxu0 }
0x1225   :  { %v1162_v5 = vadd.f32 %v1109_v60, %v3132_v3  ;;  %v2698_v60 = vld [vmem:[%s3671_s6 + $0x14] ss:$8 sps:$4 sm:$0xff]  }
0x1226   :  { %v2586_v63 = vpop.f32.mrf.mxu0  ;;  %1428 = vmatprep.subr.bf16.mxu0 %v2698_v60 }
0x1227   :  { %2816 = vtanh.f32 %v1162_v5  ;;  %v2364_v12 = vmul.f32 -1.442695, %v1162_v5  ;;  %v2704_v5 = vld [vmem:[%s3670_s5 + $0x14] ss:$8 sps:$4 sm:$0xff]   ;;  %v2702_v63 = vld [vmem:[%s3670_s5 + $0x10] ss:$8 sps:$4 sm:$0xff]  }
0x1228   :  { %v1112_v11 = vpop.f32.mrf.mxu0  ;;  %1538 = vmatprep.subr.bf16.mxu1 %v2704_v5 }
0x1229   :  { %2818 = vpow2.f32 %v2364_v12  ;;  %v2706_v11 = vld [vmem:[%s3670_s5] ss:$8 sps:$4 sm:$0xff]  }
0x122a   :  { %v2587_v0 = vpop.f32.mrf.mxu0 }
0x122b   :  { %v2708_v0 = vld [vmem:[%s3670_s5 + $0x4] ss:$8 sps:$4 sm:$0xff]  }
0x1230   :  { %v2815_v4 = vpop.eup %2814 }
0x1231   :  { %1208 = vrot.lane.b32.xlu1 %v2815_v4, %s2940_s0 }
0x1234   :  { %v2817_v9 = vpop.eup %2816 }
0x1235   :  { %1173 = vrot.lane.b32.xlu0 %v2817_v9, %s2940_s0 }
0x1236   :  { %v2819_v16 = vpop.eup %2818 }
0x1237   :  { %v1167_v62 = vadd.f32 1.0, %v2819_v16  ;;  %v1366_v16 = vpack.c.bf16 %v3215_v28, %v3255_v23  ;;  %v3452_v28 = vld [vmem:[%s3673_s8] sm:$0xff]  }
0x1239   :  { %2820 = vrcp.f32 %v1167_v62  ;;  %v1356_v62 = vpack.c.bf16 %v3194_v47, %v3146_v44 }
0x1246   :  { %v2821_v7 = vpop.eup %2820 }
0x1247   :  { %v1171_v10 = vmul.f32 %v2821_v7, %v3346_v26  ;;  %v1365_v26 = vpack.c.bf16 %v3295_v22, %v3335_v20 }
0x12a3   :  { %v1209_v17 = vpop.permute.xlu1 %1208 }
0x12a4   :  { %v3374_v37 = vmul.f32 %v2813_v56, %v1209_v17  ;;  %v3444_v17 = vld [vmem:[%s3673_s8 + $0x8] sm:$0xff]  }
0x12a6   :  { %v1259_v3 = vpack.c.bf16 %v3374_v37, %v3374_v37 }
0x12a7   :  { %v1174_v18 = vpop.permute.xlu0 %1173 }
0x12a8   :  { %v1176_v19 = vmul.f32 %v2821_v7, %v1174_v18  ;;  %1261 = vrot.lane.b32.xlu1 %v1259_v3, %s2941_s18 }
0x12aa   :  { %1178 = vrot.lane.b32.xlu0 %v1176_v19, %s2940_s0 }
0x131a   :  { %v1262_v61 = vpop.permute.xlu1 %1261 }
0x131b   :  { %2609 = vmatmul.mubr.msk.bf16.vlgmr.msra.gmra.mxu1 %vm202_vm3, %v1262_v61 }
0x131c   :  { %v1179_v21 = vpop.permute.xlu0 %1178  ;;  %1558 = vmatprep.mubr.bf16.mxu1 %v2938_v2  ;;  %1539 = vmatpush1.bf16.msra.mxu1 %v2702_v63 }
0x131d   :  { %v3383_v13 = vadd.f32 %v1179_v21, %v1171_v10  ;;  %1540 = vmatprep.subr.bf16.mxu1 %v2708_v0 }
0x131f   :  { %2822 = vtanh.f32 %v3383_v13 }
0x1320   :  { %1541 = vmatpush1.bf16.msra.mxu1 %v2706_v11 }
0x1321   :  { %2620 = vmatprep.subr.bf16.mxu1 %v2937_v1 }
0x132c   :  { %v2823_v55 = vpop.eup %2822 }
0x132d   :  { %1184 = vrot.lane.b32.xlu0 %v2823_v55, %s2940_s0 }
0x139f   :  { %v1185_v6 = vpop.permute.xlu0 %1184 }
0x13a0   :  { %v3387_v49 = vmul.f32 %v2821_v7, %v1185_v6 }
0x13a2   :  { %v1212_v43 = vpack.c.bf16 %v3387_v49, %v3387_v49 }
0x13a4   :  { %1214 = vrot.lane.b32.xlu0 %v1212_v43, %s2941_s18 }
0x13a8   :  { %1378 = vrot.lane.b32.xlu0 %v1365_v26, %s2941_s18 }
0x13ac   :  { %1382 = vrot.lane.b32.xlu0 %v1367_v29, %s2941_s18 }
0x13db   :  { %v1300_v14 = vpop.f32.mrf.mxu1 }
0x13dc   :  { %v1307_v32 = vadd.f32 %v1300_v14, %v3109_v33 }
0x13dd   :  { %v2610_v35 = vpop.f32.mrf.mxu1 }
0x13de   :  { %2824 = vtanh.f32 %v1307_v32  ;;  %v2369_v22 = vmul.f32 -1.442695, %v1307_v32 }
0x13df   :  { %v1303_v36 = vpop.f32.mrf.mxu1 }
0x13e0   :  { %2826 = vpow2.f32 %v2369_v22  ;;  %v3488_v22 = vld [vmem:[%s3672_s7] sm:$0x3] }
0x13e1   :  { %v2611_v39 = vpop.f32.mrf.mxu1 }
0x13eb   :  { %v2825_v42 = vpop.eup %2824 }
0x13ec   :  { %1341 = vrot.lane.b32.xlu1 %v2825_v42, %s2940_s0 }
0x13ed   :  { %v2827_v48 = vpop.eup %2826 }
0x13ee   :  { %v1335_v30 = vadd.f32 1.0, %v2827_v48 }
0x13f0   :  { %2828 = vrcp.f32 %v1335_v30 }
0x13fd   :  { %v2829_v20 = vpop.eup %2828 }
0x13fe   :  { %v1339_v50 = vmul.f32 %v2829_v20, %v1205_v59  ;;  %v2701_v59 = vld [vmem:[%s3671_s6 + $0x4] ss:$8 sps:$4 sm:$0xff]  }
0x1416   :  { %v1215_v34 = vpop.permute.xlu0 %1214 }
0x1417   :  { %2601 = vmatmul.mubr.msk.bf16.vlgmr.msra.gmra.mxu0 %vm202_vm3, %v1215_v34 }
0x1418   :  { %1448 = vmatprep.mubr.bf16.mxu0 %v2938_v2  ;;  %1429 = vmatpush1.bf16.msra.mxu0 %v2696_v58 }
0x1419   :  { %1430 = vmatprep.subr.bf16.mxu0 %v2701_v59 }
0x141a   :  { %v1379_v47 = vpop.permute.xlu0 %1378 }
0x145e   :  { %v1342_v15 = vpop.permute.xlu1 %1341 }
0x145f   :  { %v1344_v33 = vmul.f32 %v2829_v20, %v1342_v15 }
0x1461   :  { %1346 = vrot.lane.b32.xlu1 %v1344_v33, %s2940_s0 }
0x14d3   :  { %v1347_v40 = vpop.permute.xlu1 %1346 }
0x14d4   :  { %v1349_v51 = vadd.f32 %v1347_v40, %v1339_v50 }
0x14d6   :  { %2830 = vtanh.f32 %v1349_v51 }
0x14d7   :  { %v1253_v53 = vpop.f32.mrf.mxu0 }
0x14d8   :  { %v3404_v54 = vadd.f32 %v1253_v53, %v3136_v8  ;;  %v2699_v8 = vld [vmem:[%s3671_s6] ss:$8 sps:$4 sm:$0xff]  }
0x14d9   :  { %v2602_v56 = vpop.f32.mrf.mxu0  ;;  %1431 = vmatpush1.bf16.msra.mxu0 %v2699_v8 }
0x14da   :  { %2612 = vmatprep.subr.bf16.mxu0 %v2937_v1 }
0x14db   :  { %v1256_v46 = vpop.f32.mrf.mxu0 }
0x14dd   :  { %v2603_v57 = vpop.f32.mrf.mxu0 }
0x14e3   :  { %v2831_v52 = vpop.eup %2830 }
0x14e4   :  { %1352 = vrot.lane.b32.xlu1 %v2831_v52, %s2940_s0 }
0x1556   :  { %v1353_v4 = vpop.permute.xlu1 %1352 }
0x1557   :  { %v1355_v9 = vmul.f32 %v2829_v20, %v1353_v4  ;;  %v3493_v20 = vrot.slane %v3488_v22, %v76_v25 }
0x1559   :  { %v1364_v12 = vpack.c.bf16 %v3374_v37, %v1355_v9  ;;  %v1383_v37 = vpop.permute.xlu0 %1382  ;;  %v2368_v9 = vmul.f32 -1.442695, %v3404_v54 }
0x155b   :  { %1376 = vrot.lane.b32.xlu1 %v1364_v12, %s2941_s18 }
0x155f   :  { %1380 = vrot.lane.b32.xlu1 %v1366_v16, %s2941_s18 }
0x1563   :  { %1486 = vrot.lane.b32.xlu1 %v1356_v62, %s2941_s18 }
0x15cd   :  { %v1377_v3 = vpop.permute.xlu1 %1376 }
0x15ce   :  { %2374 = vmatmul.mubr.msk.bf16.vlgmr.msra.gmra.mxu0 %vm202_vm3, %v1377_v3 }
0x15cf   :  { %2613 = vmatpush3.bf16.msra.mxu0 %v3444_v17  ;;  %1456 = vmatprep.mubr.bf16.mxu0 %v2938_v2 }
0x15d0   :  { %2614 = vmatprep.subr.bf16.mxu0 %v2937_v1 }
0x15d1   :  { %v1381_v44 = vpop.permute.xlu1 %1380 }
0x15d3   :  { %2615 = vmatpush3.bf16.msra.mxu0 %v3452_v28 }
0x15d4   :  { %2628 = vmatprep.subr.bf16.mxu0 %v2937_v1 }
0x15d5   :  { %v1487_v23 = vpop.permute.xlu1 %1486 }
0x15d6   :  { %2375 = vmatmul.mubr.msk.bf16.gmra.mxu0 %vm202_vm3, %v1379_v47  ;;  %2382 = vmatmul.mubr.msk.bf16.vlgmr.msra.gmra.mxu1 %vm202_vm3, %v1487_v23 }
0x15d7   :  { %1464 = vmatprep.mubr.bf16.mxu0 %v2938_v2  ;;  %1566 = vmatprep.mubr.bf16.mxu1 %v2938_v2 }
0x15de   :  { %2376 = vmatmul.mubr.msk.bf16.gmra.mxu0 %vm202_vm3, %v1381_v44 }
0x15df   :  { %1472 = vmatprep.mubr.bf16.mxu0 %v2938_v2 }
0x15e6   :  { %2377 = vmatmul.mubr.msk.bf16.gmra.mxu0 %vm202_vm3, %v1383_v37 }
0x15e7   :  { %2616 = vmatprep.mubr.msk.bf16.mxu0 %vm2939_vm0, %v2937_v1 }
0x15ee   :  { %2617 = vmatmul.mubr.bf16.vlgmr.msra.gmra.mxu0 %v2938_v2 }
0x15ef   :  { %2629 = vmatpush3.bf16.msra.mxu0 %v3444_v17  ;;  %2632 = vmatprep.mubr.msk.bf16.mxu0 %vm2939_vm0, %v2937_v1 }
0x15f0   :  { %2630 = vmatprep.subr.bf16.mxu0 %v2937_v1 }
0x15f3   :  { %2631 = vmatpush3.bf16.msra.mxu0 %v3452_v28 }
0x15f4   :  { %2644 = vmatprep.subr.bf16.mxu0 %v2937_v1 }
0x168e   :  { %v1450_v7 = vpop.f32.mrf.mxu0 }
0x1690   :  { %v1452_v18 = vpop.f32.mrf.mxu0 }
0x1692   :  { %v1453_v19 = vpop.f32.mrf.mxu0 }
0x1694   :  { %v1455_v61 = vpop.f32.mrf.mxu0 }
0x1696   :  { %v3473_v10 = vpop.f32.mrf.mxu0  ;;  %v1560_v21 = vpop.f32.mrf.mxu1 }
0x1697   :  { %v1561_v30 = vadd.f32 %v1560_v21, %v1450_v7 }
0x1698   :  { %v1460_v55 = vpop.f32.mrf.mxu0  ;;  %v1562_v6 = vpop.f32.mrf.mxu1 }
0x1699   :  { %v1604_v50 = vadd.f32 %v3493_v20, %v1561_v30 }
0x169a   :  { %v3475_v43 = vpop.f32.mrf.mxu0  ;;  %v1563_v26 = vpop.f32.mrf.mxu1 }
0x169b   :  { %v3477_v29 = vadd.f32 %v1563_v26, %v1453_v19 }
0x169c   :  { %v1463_v14 = vpop.f32.mrf.mxu0  ;;  %v1565_v32 = vpop.f32.mrf.mxu1 }
0x169d   :  { %v1605_v14 = vadd.f32 %v3493_v20, %v3477_v29 }
0x169e   :  { %v3479_v35 = vpop.f32.mrf.mxu0 }
0x16a0   :  { %v1468_v36 = vpop.f32.mrf.mxu0 }
0x16a2   :  { %v3481_v39 = vpop.f32.mrf.mxu0 }
0x16a4   :  { %v1471_v42 = vpop.f32.mrf.mxu0 }
0x16a6   :  { %v3483_v34 = vpop.f32.mrf.mxu0 }
0x16a8   :  { %v1476_v48 = vpop.f32.mrf.mxu0 }
0x16aa   :  { %v3495_v15 = vpop.f32.mrf.mxu0 }
0x16ac   :  { %v3497_v33 = vpop.f32.mrf.mxu0 }
0x16ae   :  { %v1667_v40 = vpop.f32.mrf.mxu0 }
0x16af   :  { %v1725_v51 = vadd.f32 %v1667_v40, %v1604_v50 }
0x16b0   :  { %v2618_v53 = vpop.f32.mrf.mxu0 }
0x16b1   :  { %2832 = vtanh.f32 %v1725_v51  ;;  %v2390_v52 = vmul.f32 -1.442695, %v1725_v51 }
0x16b2   :  { %v1670_v56 = vpop.f32.mrf.mxu0 }
0x16b3   :  { %2834 = vpow2.f32 %v2390_v52 }
0x16b4   :  { %v2619_v46 = vpop.f32.mrf.mxu0 }
0x16be   :  { %v2833_v57 = vpop.eup %2832 }
0x16bf   :  { %1736 = vrot.lane.b32.xlu0 %v2833_v57, %s2940_s0 }
0x16c0   :  { %v2835_v58 = vpop.eup %2834 }
0x16c1   :  { %v1730_v25 = vadd.f32 1.0, %v2835_v58 }
0x16c3   :  { %2836 = vrcp.f32 %v1730_v25 }
0x16d0   :  { %v2837_v60 = vpop.eup %2836 }
0x16d1   :  { %v1734_v5 = vmul.f32 0.0, %v2837_v60 }
0x1731   :  { %v1737_v59 = vpop.permute.xlu0 %1736 }
0x1732   :  { %v1739_v8 = vmul.f32 %v2837_v60, %v1737_v59  ;;  %v2710_v59 = vld [vmem:[%s3674_s9 + $0x8] sm:$0xff]  }
0x1733   :  { %2621 = vmatpush3.bf16.msra.mxu1 %v2710_v59 }
0x1734   :  { %1741 = vrot.lane.b32.xlu1 %v1739_v8, %s2940_s0  ;;  %v2711_v8 = vld [vmem:[%s3674_s9] sm:$0xff]   ;;  %2622 = vmatprep.subr.bf16.mxu1 %v2937_v1 }
0x1737   :  { %2623 = vmatpush3.bf16.msra.mxu1 %v2711_v8 }
0x1738   :  { %2636 = vmatprep.subr.bf16.mxu1 %v2937_v1 }
0x17a6   :  { %v1742_v63 = vpop.permute.xlu1 %1741 }
0x17a7   :  { %v3502_v11 = vadd.f32 %v1742_v63, %v1734_v5  ;;  %v1358_v5 = vpack.c.bf16 %v3352_v31, %v3313_v38 }
0x17a9   :  { %2838 = vtanh.f32 %v3502_v11 }
0x17aa   :  { %2840 = vtanh.f32 %v3404_v54 }
0x17ab   :  { %2842 = vpow2.f32 %v2368_v9 }
0x17b6   :  { %v2839_v0 = vpop.eup %2838 }
0x17b7   :  { %1747 = vrot.lane.b32.xlu0 %v2839_v0, %s2940_s0  ;;  %v2841_v4 = vpop.eup %2840 }
0x17b8   :  { %v2843_v12 = vpop.eup %2842 }
0x17b9   :  { %v1311_v16 = vadd.f32 1.0, %v2843_v12 }
0x17bb   :  { %1317 = vrot.lane.b32.xlu0 %v2841_v4, %s2940_s0  ;;  %2844 = vrcp.f32 %v1311_v16 }
0x17c8   :  { %v2845_v47 = vpop.eup %2844 }
0x17c9   :  { %v1315_v18 = vmul.f32 %v2845_v47, %v3383_v13  ;;  %v1357_v13 = vpack.c.bf16 %v3273_v41, %v3233_v45 }
0x1829   :  { %v1748_v62 = vpop.permute.xlu0 %1747 }
0x182a   :  { %v1750_v3 = vmul.f32 %v2837_v60, %v1748_v62 }
0x182c   :  { %v1775_v44 = vpack.c.bf16 %v1750_v3, %v1750_v3 }
0x182d   :  { %v1318_v23 = vpop.permute.xlu0 %1317 }
0x182e   :  { %v1320_v37 = vmul.f32 %v2845_v47, %v1318_v23  ;;  %1777 = vrot.lane.b32.xlu1 %v1775_v44, %s2941_s18 }
0x1830   :  { %1322 = vrot.lane.b32.xlu0 %v1320_v37, %s2940_s0 }
0x18a0   :  { %v1778_v7 = vpop.permute.xlu1 %1777 }
0x18a1   :  { %2633 = vmatmul.mubr.msk.bf16.vlgmr.msra.gmra.mxu0 %vm202_vm3, %v1778_v7 }
0x18a2   :  { %v1323_v54 = vpop.permute.xlu0 %1322  ;;  %2645 = vmatpush3.bf16.msra.mxu0 %v3444_v17  ;;  %2648 = vmatprep.mubr.msk.bf16.mxu0 %vm2939_vm0, %v2937_v1 }
0x18a3   :  { %v1325_v19 = vadd.f32 %v1323_v54, %v1315_v18  ;;  %2646 = vmatprep.subr.bf16.mxu0 %v2937_v1 }
0x18a5   :  { %2846 = vtanh.f32 %v1325_v19 }
0x18a6   :  { %2647 = vmatpush3.bf16.msra.mxu0 %v3452_v28 }
0x18a7   :  { %2660 = vmatprep.subr.bf16.mxu0 %v2937_v1 }
0x18b2   :  { %v2847_v61 = vpop.eup %2846 }
0x18b3   :  { %1328 = vrot.lane.b32.xlu0 %v2847_v61, %s2940_s0 }
0x18b7   :  { %1488 = vrot.lane.b32.xlu0 %v1357_v13, %s2941_s18 }
0x1925   :  { %v1329_v21 = vpop.permute.xlu0 %1328 }
0x1926   :  { %v1331_v55 = vmul.f32 %v2845_v47, %v1329_v21  ;;  %v1601_v47 = vrot.slane %v3488_v22, %v80_v27 }
0x1928   :  { %v1359_v6 = vpack.c.bf16 %v1331_v55, %v3387_v49 }
0x1929   :  { %v1489_v26 = vpop.permute.xlu0 %1488 }
0x192a   :  { %1492 = vrot.lane.b32.xlu0 %v1359_v6, %s2941_s18  ;;  %2383 = vmatmul.mubr.msk.bf16.gmra.mxu1 %vm202_vm3, %v1489_v26 }
0x192b   :  { %1574 = vmatprep.mubr.bf16.mxu1 %v2938_v2 }
0x1961   :  { %v1816_v32 = vpop.f32.mrf.mxu0 }
0x1962   :  { %v1822_v36 = vadd.f32 %v1816_v32, %v1605_v14 }
0x1963   :  { %v2634_v42 = vpop.f32.mrf.mxu0 }
0x1964   :  { %2848 = vtanh.f32 %v1822_v36  ;;  %v2393_v49 = vmul.f32 -1.442695, %v1822_v36 }
0x1965   :  { %v1819_v45 = vpop.f32.mrf.mxu0 }
0x1966   :  { %2850 = vpow2.f32 %v2393_v49 }
0x1967   :  { %v2635_v41 = vpop.f32.mrf.mxu0 }
0x1971   :  { %v2849_v48 = vpop.eup %2848 }
0x1972   :  { %1832 = vrot.lane.b32.xlu1 %v2849_v48, %s2940_s0 }
0x1973   :  { %v2851_v30 = vpop.eup %2850 }
0x1974   :  { %v1826_v50 = vadd.f32 1.0, %v2851_v30 }
0x1976   :  { %2852 = vrcp.f32 %v1826_v50 }
0x1983   :  { %v2853_v40 = vpop.eup %2852 }
0x1984   :  { %v1830_v52 = vmul.f32 %v2853_v40, %v3502_v11 }
0x199c   :  { %v1493_v9 = vpop.permute.xlu0 %1492 }
0x19e4   :  { %v1833_v51 = vpop.permute.xlu1 %1832 }
0x19e5   :  { %v1835_v53 = vmul.f32 %v2853_v40, %v1833_v51 }
0x19e7   :  { %1837 = vrot.lane.b32.xlu1 %v1835_v53, %s2940_s0 }
0x19ea   :  { %v1568_v29 = vpop.f32.mrf.mxu1 }
0x19eb   :  { %v1569_v21 = vadd.f32 %v1568_v29, %v3473_v10 }
0x19ec   :  { %v1570_v56 = vpop.f32.mrf.mxu1 }
0x19ed   :  { %v1606_v55 = vadd.f32 %v3493_v20, %v1569_v21 }
0x19ee   :  { %v3531_v46 = vpop.f32.mrf.mxu1 }
0x19ef   :  { %v1572_v29 = vadd.f32 %v3531_v46, %v3475_v43 }
0x19f0   :  { %v1573_v57 = vpop.f32.mrf.mxu1 }
0x19f1   :  { %v1607_v56 = vadd.f32 %v3493_v20, %v1572_v29 }
0x1a59   :  { %v1838_v58 = vpop.permute.xlu1 %1837 }
0x1a5a   :  { %v3534_v25 = vadd.f32 %v1838_v58, %v1830_v52 }
0x1a5c   :  { %2854 = vtanh.f32 %v3534_v25 }
0x1a69   :  { %v2855_v60 = vpop.eup %2854 }
0x1a6a   :  { %1843 = vrot.lane.b32.xlu1 %v2855_v60, %s2940_s0 }
0x1a6e   :  { %1490 = vrot.lane.b32.xlu1 %v1358_v5, %s2941_s18 }
0x1adc   :  { %v1844_v63 = vpop.permute.xlu1 %1843 }
0x1add   :  { %v1846_v11 = vmul.f32 %v2853_v40, %v1844_v63 }
0x1adf   :  { %v1847_v0 = vpack.c.bf16 %v1846_v11, %v1846_v11 }
0x1ae0   :  { %v1491_v4 = vpop.permute.xlu1 %1490 }
0x1ae1   :  { %1849 = vrot.lane.b32.xlu1 %v1847_v0, %s2941_s18  ;;  %2384 = vmatmul.mubr.msk.bf16.gmra.mxu1 %vm202_vm3, %v1491_v4 }
0x1ae2   :  { %1582 = vmatprep.mubr.bf16.mxu1 %v2938_v2 }
0x1ae9   :  { %2385 = vmatmul.mubr.msk.bf16.gmra.mxu1 %vm202_vm3, %v1493_v9 }
0x1aea   :  { %2624 = vmatprep.mubr.msk.bf16.mxu1 %vm2939_vm0, %v2937_v1 }
0x1af1   :  { %2625 = vmatmul.mubr.bf16.vlgmr.msra.gmra.mxu1 %v2938_v2 }
0x1af2   :  { %2637 = vmatpush3.bf16.msra.mxu1 %v3444_v17  ;;  %2640 = vmatprep.mubr.msk.bf16.mxu1 %vm2939_vm0, %v2937_v1 }
0x1af3   :  { %2638 = vmatprep.subr.bf16.mxu1 %v2937_v1 }
0x1af6   :  { %2639 = vmatpush3.bf16.msra.mxu1 %v3452_v28 }
0x1af7   :  { %2652 = vmatprep.subr.bf16.mxu1 %v2937_v1 }
0x1b53   :  { %v1850_v38 = vpop.permute.xlu1 %1849 }
0x1b54   :  { %2641 = vmatmul.mubr.msk.bf16.vlgmr.msra.gmra.mxu1 %vm202_vm3, %v1850_v38 }
0x1b55   :  { %2653 = vmatpush3.bf16.msra.mxu1 %v3444_v17  ;;  %2656 = vmatprep.mubr.msk.bf16.mxu1 %vm2939_vm0, %v2937_v1 }
0x1b56   :  { %2654 = vmatprep.subr.bf16.mxu1 %v2937_v1 }
0x1b59   :  { %2655 = vmatpush3.bf16.msra.mxu1 %v3452_v28 }
0x1b5a   :  { %2668 = vmatprep.subr.bf16.mxu1 %v2937_v1 }
0x1ba1   :  { %v3569_v2 = vpop.f32.mrf.mxu1 }
0x1ba3   :  { %v1578_v31 = vpop.f32.mrf.mxu1 }
0x1ba5   :  { %v3571_v12 = vpop.f32.mrf.mxu1 }
0x1ba7   :  { %v1581_v16 = vpop.f32.mrf.mxu1 }
0x1ba9   :  { %v3573_v62 = vpop.f32.mrf.mxu1 }
0x1bab   :  { %v1586_v3 = vpop.f32.mrf.mxu1 }
0x1bad   :  { %v3575_v44 = vpop.f32.mrf.mxu1 }
0x1baf   :  { %v1589_v23 = vpop.f32.mrf.mxu1 }
0x1bb0   :  { %v1590_v37 = vadd.f32 %v1589_v23, %v3497_v33  ;;  %v1577_v23 = vadd.f32 %v3569_v2, %v3479_v35 }
0x1bb1   :  { %v1719_v7 = vpop.f32.mrf.mxu1 }
0x1bb2   :  { %v1612_v18 = vadd.f32 %v1601_v47, %v1590_v37  ;;  %v1608_v37 = vadd.f32 %v3493_v20, %v1577_v23 }
0x1bb3   :  { %v2626_v54 = vpop.f32.mrf.mxu1 }
0x1bb4   :  { %v3581_v19 = vadd.f32 %v1719_v7, %v1612_v18 }
0x1bb5   :  { %v1722_v61 = vpop.f32.mrf.mxu1 }
0x1bb7   :  { %v2627_v13 = vpop.f32.mrf.mxu1 }
0x1c14   :  { %v1888_v6 = vpop.f32.mrf.mxu1 }
0x1c15   :  { %v1894_v26 = vadd.f32 %v1888_v6, %v1606_v55 }
0x1c16   :  { %v2642_v14 = vpop.f32.mrf.mxu1 }
0x1c17   :  { %2856 = vtanh.f32 %v1894_v26  ;;  %v2395_v33 = vmul.f32 -1.442695, %v1894_v26 }
0x1c18   :  { %v1891_v24 = vpop.f32.mrf.mxu1 }
0x1c19   :  { %2858 = vpow2.f32 %v2395_v33 }
0x1c1a   :  { %v2643_v27 = vpop.f32.mrf.mxu1 }
0x1c24   :  { %v2857_v22 = vpop.eup %2856 }
0x1c25   :  { %1904 = vrot.lane.b32.xlu0 %v2857_v22, %s2940_s0 }
0x1c26   :  { %v2859_v32 = vpop.eup %2858 }
0x1c27   :  { %v1898_v36 = vadd.f32 1.0, %v2859_v32 }
0x1c29   :  { %2860 = vrcp.f32 %v1898_v36 }
0x1c36   :  { %v2861_v42 = vpop.eup %2860 }
0x1c37   :  { %v1902_v10 = vmul.f32 %v2861_v42, %v3534_v25 }
0x1c97   :  { %v1905_v45 = vpop.permute.xlu0 %1904 }
0x1c98   :  { %v1907_v41 = vmul.f32 %v2861_v42, %v1905_v45 }
0x1c9a   :  { %1909 = vrot.lane.b32.xlu1 %v1907_v41, %s2940_s0  ;;  %v1580_v41 = vadd.f32 %v3571_v12, %v3481_v39 }
0x1d0c   :  { %v1910_v48 = vpop.permute.xlu1 %1909 }
0x1d0d   :  { %v1912_v49 = vadd.f32 %v1910_v48, %v1902_v10  ;;  %v1609_v10 = vadd.f32 %v3493_v20, %v1580_v41 }
0x1d0f   :  { %2862 = vtanh.f32 %v1912_v49 }
0x1d1c   :  { %v2863_v30 = vpop.eup %2862 }
0x1d1d   :  { %1915 = vrot.lane.b32.xlu0 %v2863_v30, %s2940_s0 }
0x1d8f   :  { %v1916_v50 = vpop.permute.xlu0 %1915 }
0x1d90   :  { %v1918_v40 = vmul.f32 %v2861_v42, %v1916_v50 }
0x1d92   :  { %v1919_v51 = vpack.c.bf16 %v1918_v40, %v1918_v40 }
0x1d94   :  { %1921 = vrot.lane.b32.xlu1 %v1919_v51, %s2941_s18 }
0x1e06   :  { %v1922_v53 = vpop.permute.xlu1 %1921 }
0x1e07   :  { %2649 = vmatmul.mubr.msk.bf16.vlgmr.msra.gmra.mxu0 %vm202_vm3, %v1922_v53 }
0x1e08   :  { %2661 = vmatpush3.bf16.msra.mxu0 %v3444_v17  ;;  %2664 = vmatprep.mubr.msk.bf16.mxu0 %vm2939_vm0, %v2937_v1 }
0x1e09   :  { %2662 = vmatprep.subr.bf16.mxu0 %v2937_v1 }
0x1e0c   :  { %2663 = vmatpush3.bf16.msra.mxu0 %v3452_v28 }
0x1e0d   :  { %2676 = vmatprep.subr.bf16.mxu0 %v2937_v1 }
0x1ec7   :  { %v1960_v57 = vpop.f32.mrf.mxu0 }
0x1ec8   :  { %v1966_v52 = vadd.f32 %v1960_v57, %v1607_v56 }
0x1ec9   :  { %v2650_v58 = vpop.f32.mrf.mxu0 }
0x1eca   :  { %2864 = vtanh.f32 %v1966_v52  ;;  %v2397_v8 = vmul.f32 -1.442695, %v1966_v52 }
0x1ecb   :  { %v1963_v25 = vpop.f32.mrf.mxu0 }
0x1ecc   :  { %2866 = vpow2.f32 %v2397_v8  ;;  %v1585_v8 = vadd.f32 %v3573_v62, %v3483_v34 }
0x1ecd   :  { %v2651_v60 = vpop.f32.mrf.mxu0 }
0x1ed7   :  { %v2865_v59 = vpop.eup %2864 }
0x1ed8   :  { %1976 = vrot.lane.b32.xlu0 %v2865_v59, %s2940_s0 }
0x1ed9   :  { %v2867_v5 = vpop.eup %2866 }
0x1eda   :  { %v1970_v63 = vadd.f32 1.0, %v2867_v5  ;;  %v1610_v5 = vadd.f32 %v3493_v20, %v1585_v8 }
0x1edc   :  { %2868 = vrcp.f32 %v1970_v63 }
0x1ee9   :  { %v2869_v11 = vpop.eup %2868 }
0x1eea   :  { %v1974_v43 = vmul.f32 %v2869_v11, %v1912_v49 }
0x1f4a   :  { %v1977_v0 = vpop.permute.xlu0 %1976 }
0x1f4b   :  { %v1979_v4 = vmul.f32 %v2869_v11, %v1977_v0 }
0x1f4d   :  { %1981 = vrot.lane.b32.xlu1 %v1979_v4, %s2940_s0 }
0x1fbf   :  { %v1982_v46 = vpop.permute.xlu1 %1981 }
0x1fc0   :  { %v1984_v9 = vadd.f32 %v1982_v46, %v1974_v43 }
0x1fc2   :  { %2870 = vtanh.f32 %v1984_v9 }
0x1fcf   :  { %v2871_v38 = vpop.eup %2870 }
0x1fd0   :  { %1987 = vrot.lane.b32.xlu0 %v2871_v38, %s2940_s0 }
0x2042   :  { %v1988_v31 = vpop.permute.xlu0 %1987 }
0x2043   :  { %v1990_v16 = vmul.f32 %v2869_v11, %v1988_v31 }
0x2045   :  { %v1991_v3 = vpack.c.bf16 %v1990_v16, %v1990_v16 }
0x2047   :  { %1993 = vrot.lane.b32.xlu1 %v1991_v3, %s2941_s18 }
0x20b9   :  { %v1994_v47 = vpop.permute.xlu1 %1993 }
0x20ba   :  { %2657 = vmatmul.mubr.msk.bf16.vlgmr.msra.gmra.mxu1 %vm202_vm3, %v1994_v47 }
0x20bb   :  { %2669 = vmatpush3.bf16.msra.mxu1 %v3444_v17  ;;  %2672 = vmatprep.mubr.msk.bf16.mxu1 %vm2939_vm0, %v2937_v1 }
0x20bc   :  { %2670 = vmatprep.subr.bf16.mxu1 %v2937_v1 }
0x20bf   :  { %2671 = vmatpush3.bf16.msra.mxu1 %v3452_v28 }
0x217a   :  { %v2032_v7 = vpop.f32.mrf.mxu1 }
0x217b   :  { %v2038_v18 = vadd.f32 %v2032_v7, %v1608_v37 }
0x217c   :  { %v2658_v54 = vpop.f32.mrf.mxu1 }
0x217d   :  { %2872 = vtanh.f32 %v2038_v18  ;;  %v2399_v55 = vmul.f32 -1.442695, %v2038_v18  ;;  %v2391_v18 = vmul.f32 -1.442695, %v3581_v19 }
0x217e   :  { %v2035_v61 = vpop.f32.mrf.mxu1 }
0x217f   :  { %2874 = vpow2.f32 %v2399_v55 }
0x2180   :  { %v2659_v13 = vpop.f32.mrf.mxu1 }
0x218a   :  { %v2873_v21 = vpop.eup %2872 }
0x218b   :  { %2048 = vrot.lane.b32.xlu0 %v2873_v21, %s2940_s0 }
0x218c   :  { %v2875_v6 = vpop.eup %2874 }
0x218d   :  { %v2042_v26 = vadd.f32 1.0, %v2875_v6 }
0x218f   :  { %2876 = vrcp.f32 %v2042_v26 }
0x219c   :  { %v2877_v14 = vpop.eup %2876 }
0x219d   :  { %v2046_v35 = vmul.f32 %v2877_v14, %v1984_v9 }
0x21fd   :  { %v2049_v24 = vpop.permute.xlu0 %2048 }
0x21fe   :  { %v2051_v27 = vmul.f32 %v2877_v14, %v2049_v24 }
0x2200   :  { %2053 = vrot.lane.b32.xlu1 %v2051_v27, %s2940_s0 }
0x2272   :  { %v2054_v2 = vpop.permute.xlu1 %2053 }
0x2273   :  { %v2056_v22 = vadd.f32 %v2054_v2, %v2046_v35 }
0x2275   :  { %2878 = vtanh.f32 %v2056_v22 }
0x2282   :  { %v2879_v33 = vpop.eup %2878 }
0x2283   :  { %2059 = vrot.lane.b32.xlu0 %v2879_v33, %s2940_s0 }
0x22f5   :  { %v2060_v32 = vpop.permute.xlu0 %2059 }
0x22f6   :  { %v2062_v36 = vmul.f32 %v2877_v14, %v2060_v32 }
0x22f8   :  { %v2063_v42 = vpack.c.bf16 %v2062_v36, %v2062_v36 }
0x22fa   :  { %2065 = vrot.lane.b32.xlu1 %v2063_v42, %s2941_s18 }
0x236c   :  { %v2066_v45 = vpop.permute.xlu1 %2065 }
0x236d   :  { %2665 = vmatmul.mubr.msk.bf16.vlgmr.msra.gmra.mxu0 %vm202_vm3, %v2066_v45 }
0x236e   :  { %2677 = vmatpush3.bf16.msra.mxu0 %v3444_v17  ;;  %2680 = vmatprep.mubr.msk.bf16.mxu0 %vm2939_vm0, %v2937_v1 }
0x236f   :  { %2678 = vmatprep.subr.bf16.mxu0 %v2937_v1 }
0x2372   :  { %2679 = vmatpush3.bf16.msra.mxu0 %v3452_v28 }
0x242d   :  { %v2104_v48 = vpop.f32.mrf.mxu0 }
0x242e   :  { %v2110_v49 = vadd.f32 %v2104_v48, %v1609_v10 }
0x242f   :  { %v2666_v30 = vpop.f32.mrf.mxu0 }
0x2430   :  { %2880 = vtanh.f32 %v2110_v49  ;;  %v2401_v17 = vmul.f32 -1.442695, %v2110_v49 }
0x2431   :  { %v2107_v50 = vpop.f32.mrf.mxu0 }
0x2432   :  { %2882 = vpow2.f32 %v2401_v17 }
0x2433   :  { %v2667_v40 = vpop.f32.mrf.mxu0 }
0x243d   :  { %v2881_v51 = vpop.eup %2880 }
0x243e   :  { %2120 = vrot.lane.b32.xlu0 %v2881_v51, %s2940_s0 }
0x243f   :  { %v2883_v53 = vpop.eup %2882 }
0x2440   :  { %v2114_v1 = vadd.f32 1.0, %v2883_v53 }
0x2442   :  { %2884 = vrcp.f32 %v2114_v1  ;;  %v2407_v1 = vld [vmem:[%s3676_s11] ss:$0 sm:$0xff] }
0x244f   :  { %v2885_v28 = vpop.eup %2884 }
0x2450   :  { %v2118_v39 = vmul.f32 %v2885_v28, %v2056_v22  ;;  %v1588_v22 = vadd.f32 %v3575_v44, %v3495_v15 }
0x2452   :  { %v1611_v33 = vadd.f32 %v3493_v20, %v1588_v22  ;;  %v2406_v20 = vld [vmem:[%s3675_s10] ss:$0 sm:$0xff] }
0x24b0   :  { %v2121_v29 = vpop.permute.xlu0 %2120 }
0x24b1   :  { %v2123_v56 = vmul.f32 %v2885_v28, %v2121_v29 }
0x24b3   :  { %2125 = vrot.lane.b32.xlu1 %v2123_v56, %s2940_s0 }
0x2525   :  { %v2126_v12 = vpop.permute.xlu1 %2125 }
0x2526   :  { %v2128_v57 = vadd.f32 %v2126_v12, %v2118_v39 }
0x2528   :  { %2886 = vtanh.f32 %v2128_v57 }
0x2535   :  { %v2887_v52 = vpop.eup %2886 }
0x2536   :  { %2131 = vrot.lane.b32.xlu0 %v2887_v52, %s2940_s0 }
0x25a8   :  { %v2132_v58 = vpop.permute.xlu0 %2131 }
0x25a9   :  { %v2134_v25 = vmul.f32 %v2885_v28, %v2132_v58 }
0x25ab   :  { %v2135_v60 = vpack.c.bf16 %v2134_v25, %v2134_v25 }
0x25ad   :  { %2137 = vrot.lane.b32.xlu1 %v2135_v60, %s2941_s18 }
0x261f   :  { %v2138_v59 = vpop.permute.xlu1 %2137 }
0x2620   :  { %2673 = vmatmul.mubr.msk.bf16.vlgmr.msra.gmra.mxu1 %vm202_vm3, %v2138_v59 }
0x26e0   :  { %v2176_v63 = vpop.f32.mrf.mxu1 }
0x26e1   :  { %v2182_v11 = vadd.f32 %v2176_v63, %v1610_v5  ;;  %v2408_v63 = vld [vmem:[#allocation2] ss:$0 sm:$0xff] }
0x26e2   :  { %v2674_v0 = vpop.f32.mrf.mxu1 }
0x26e3   :  { %2888 = vtanh.f32 %v2182_v11  ;;  %v2403_v9 = vmul.f32 -1.442695, %v2182_v11 }
0x26e4   :  { %v2179_v4 = vpop.f32.mrf.mxu1 }
0x26e5   :  { %2890 = vpow2.f32 %v2403_v9 }
0x26e6   :  { %v2675_v43 = vpop.f32.mrf.mxu1 }
0x26f0   :  { %v2889_v46 = vpop.eup %2888 }
0x26f1   :  { %2192 = vrot.lane.b32.xlu0 %v2889_v46, %s2940_s0 }
0x26f2   :  { %v2891_v38 = vpop.eup %2890 }
0x26f3   :  { %v2186_v31 = vadd.f32 1.0, %v2891_v38 }
0x26f5   :  { %2892 = vrcp.f32 %v2186_v31 }
0x2702   :  { %v2893_v16 = vpop.eup %2892 }
0x2703   :  { %v2190_v34 = vmul.f32 %v2893_v16, %v2128_v57 }
0x2763   :  { %v2193_v3 = vpop.permute.xlu0 %2192 }
0x2764   :  { %v2195_v47 = vmul.f32 %v2893_v16, %v2193_v3 }
0x2766   :  { %2197 = vrot.lane.b32.xlu1 %v2195_v47, %s2940_s0 }
0x27d8   :  { %v2198_v62 = vpop.permute.xlu1 %2197 }
0x27d9   :  { %v2200_v23 = vadd.f32 %v2198_v62, %v2190_v34 }
0x27db   :  { %2894 = vtanh.f32 %v2200_v23 }
0x27dc   :  { %2896 = vtanh.f32 %v3581_v19 }
0x27dd   :  { %2898 = vpow2.f32 %v2391_v18 }
0x27e8   :  { %v2895_v37 = vpop.eup %2894 }
0x27e9   :  { %2203 = vrot.lane.b32.xlu0 %v2895_v37, %s2940_s0  ;;  %v2897_v7 = vpop.eup %2896 }
0x27ea   :  { %v2899_v54 = vpop.eup %2898 }
0x27eb   :  { %v1754_v61 = vadd.f32 1.0, %v2899_v54 }
0x27ed   :  { %1760 = vrot.lane.b32.xlu0 %v2897_v7, %s2940_s0  ;;  %2900 = vrcp.f32 %v1754_v61 }
0x27fa   :  { %v2901_v6 = vpop.eup %2900 }
0x27fb   :  { %v1758_v27 = vmul.f32 0.0, %v2901_v6 }
0x285b   :  { %v2204_v13 = vpop.permute.xlu0 %2203 }
0x285c   :  { %v2206_v21 = vmul.f32 %v2893_v16, %v2204_v13 }
0x285e   :  { %v2207_v55 = vpack.c.bf16 %v2206_v21, %v2206_v21 }
0x285f   :  { %v1761_v26 = vpop.permute.xlu0 %1760 }
0x2860   :  { %v1763_v14 = vmul.f32 %v2901_v6, %v1761_v26  ;;  %2209 = vrot.lane.b32.xlu1 %v2207_v55, %s2941_s18 }
0x2862   :  { %1765 = vrot.lane.b32.xlu0 %v1763_v14, %s2940_s0 }
0x28d2   :  { %v2210_v24 = vpop.permute.xlu1 %2209 }
0x28d3   :  { %2681 = vmatmul.mubr.msk.bf16.vlgmr.msra.gmra.mxu0 %vm202_vm3, %v2210_v24 }
0x28d4   :  { %v1766_v35 = vpop.permute.xlu0 %1765 }
0x28d5   :  { %v1768_v19 = vadd.f32 %v1766_v35, %v1758_v27 }
0x28d7   :  { %2902 = vtanh.f32 %v1768_v19 }
0x28e4   :  { %v2903_v2 = vpop.eup %2902 }
0x28e5   :  { %1771 = vrot.lane.b32.xlu0 %v2903_v2, %s2940_s0 }
0x28e9   :  { %2285 = vrot.lane.b32.xlu0 %v2406_v20, %s2941_s18 }
0x2957   :  { %v1772_v28 = vpop.permute.xlu0 %1771 }
0x2958   :  { %v1774_v12 = vmul.f32 %v2901_v6, %v1772_v28 }
0x295b   :  { %v2286_v56 = vpop.permute.xlu0 %2285 }
0x2993   :  { %v2248_v32 = vpop.f32.mrf.mxu0 }
0x2994   :  { %v2254_v36 = vadd.f32 %v2248_v32, %v1611_v33 }
0x2995   :  { %v2682_v42 = vpop.f32.mrf.mxu0 }
0x2996   :  { %2904 = vtanh.f32 %v2254_v36  ;;  %v2405_v48 = vmul.f32 -1.442695, %v2254_v36 }
0x2997   :  { %v2251_v45 = vpop.f32.mrf.mxu0 }
0x2998   :  { %2906 = vpow2.f32 %v2405_v48 }
0x2999   :  { %v2683_v41 = vpop.f32.mrf.mxu0 }
0x29a3   :  { %v2905_v10 = vpop.eup %2904 }
0x29a4   :  { %2264 = vrot.lane.b32.xlu1 %v2905_v10, %s2940_s0 }
0x29a5   :  { %v2907_v49 = vpop.eup %2906 }
0x29a6   :  { %v2258_v30 = vadd.f32 1.0, %v2907_v49 }
0x29a8   :  { %2908 = vrcp.f32 %v2258_v30 }
0x29b5   :  { %v2909_v50 = vpop.eup %2908 }
0x29b6   :  { %v2262_v15 = vmul.f32 %v2909_v50, %v2200_v23 }
0x2a16   :  { %v2265_v40 = vpop.permute.xlu1 %2264 }
0x2a17   :  { %v2267_v51 = vmul.f32 %v2909_v50, %v2265_v40 }
0x2a19   :  { %2269 = vrot.lane.b32.xlu1 %v2267_v51, %s2940_s0 }
0x2a8b   :  { %v2270_v44 = vpop.permute.xlu1 %2269 }
0x2a8c   :  { %v2272_v17 = vadd.f32 %v2270_v44, %v2262_v15 }
0x2a8e   :  { %2910 = vtanh.f32 %v2272_v17 }
0x2a9b   :  { %v2911_v53 = vpop.eup %2910 }
0x2a9c   :  { %2275 = vrot.lane.b32.xlu1 %v2911_v53, %s2940_s0 }
0x2aa0   :  { %2302 = vrot.lane.b32.xlu1 %v2407_v1, %s2941_s18 }
0x2b0e   :  { %v2276_v29 = vpop.permute.xlu1 %2275 }
0x2b0f   :  { %v2278_v39 = vmul.f32 %v2909_v50, %v2276_v29 }
0x2b11   :  { %v2288_v57 = vmul.f32 %v2286_v56, %v2278_v39 }
0x2b12   :  { %v2303_v52 = vpop.permute.xlu1 %2302 }
0x2b13   :  { %v2305_v58 = vmul.f32 %v2303_v52, %v1774_v12  ;;  %2290 = vrot.lane.b32.xlu0 %v2288_v57, %s2941_s18 }
0x2b15   :  { %2307 = vrot.lane.b32.xlu1 %v2305_v58, %s2941_s18 }
0x2b85   :  { %v2291_v25 = vpop.permute.xlu0 %2290 }
0x2b86   :  { %v2293_v60 = vsel %vm202_vm3, %v2291_v25, 0.0 }
0x2b87   :  { %v2308_v59 = vpop.permute.xlu1 %2307  ;;  %2294 = vadd.xlane.f32.xlu0 %v2293_v60 }
0x2b88   :  { %v2310_v8 = vsel %vm202_vm3, %v2308_v59, 0.0 }
0x2b89   :  { %2311 = vadd.xlane.f32.xlu1 %v2310_v8 }
0x2c10   :  { %v2295_v5 = vpop.xlane.xlu0 %2294 }
0x2c12   :  { %v2312_v11 = vpop.xlane.xlu1 %2311 }
0x2c13   :  { %v2313_v0 = vadd.f32 %v2312_v11, %v2295_v5 }
0x2c15   :  { %v2321_v4 = vadd.f32 %v2408_v63, %v2313_v0 }
0x2c17   :  { %2323 = vst.msk [vmem:[%s3678_s13] sm:$0xff] %vm2322_vm4, %v2321_v4 }
0x2c18   :  { %2328 = vsyncpa [#allocation4], 1 }

</bundles_post_ra>
